<compile_context>
chip_gen: v6e
topology: v6e:2x2x1
jax: 0.10.0
libtpu: 0.0.40
codegen_flags: <defaults>
</compile_context>

<pallas_src>
import functools

import jax
import jax.numpy as jnp
from jax.experimental import pallas as pl
from jax.experimental.pallas import tpu as pltpu

_BN_EPS = 1e-5


def _make_divisible(v, divisor, min_value=None):
    if min_value is None:
        min_value = divisor
    new_v = max(min_value, int(v + divisor / 2) // divisor * divisor)
    if new_v < 0.9 * v:
        new_v += divisor
    return new_v


def _hardswish(v):
    return v * jnp.clip(v + 3.0, 0.0, 6.0) * (1.0 / 6.0)


def _hardsigmoid(v):
    return jnp.clip(v + 3.0, 0.0, 6.0) * (1.0 / 6.0)


def _bn_train(v, gamma, beta, reduce_axes):
    # Training-mode BatchNorm1d: biased batch statistics, fused single-pass
    # (var = E[x^2] - mean^2), all in f32.  gamma/beta already broadcast-shaped.
    n = 1
    for a in reduce_axes:
        n *= v.shape[a]
    s1 = v
    s2 = v * v
    for a in reduce_axes:
        s1 = jnp.sum(s1, axis=a, keepdims=True)
        s2 = jnp.sum(s2, axis=a, keepdims=True)
    mean = s1 * (1.0 / n)
    var = s2 * (1.0 / n) - mean * mean
    return (v - mean) * (jax.lax.rsqrt(var + _BN_EPS) * gamma) + beta


def _inv_res_kernel(x_ref, w_ref, p_ref, out_ref, stage_ref, *,
                    B, L, c_in, c_exp, c_sq, c_out, use_res):
    f32 = jnp.float32
    cdt = w_ref.dtype                      # matmul operand dtype (bf16 by default)

    # ---- unpack the single packed weight slab (static slices, one DMA) ------
    o_dw = c_in
    o_se1 = o_dw + L
    o_se2 = o_se1 + c_sq
    o_pr = o_se2 + c_exp
    w_exp = w_ref[0:c_exp, 0:c_in]                  # (c_exp, c_in)  expand  (out, in)
    w_dw = w_ref[0:L, o_dw:o_dw + L]                # (L, L)         depthwise (out, in)
    w_se1t = w_ref[0:c_exp, o_se1:o_se1 + c_sq]     # (c_exp, c_sq)  SE fc1, pre-transposed
    w_se2t = w_ref[0:c_sq, o_se2:o_se2 + c_exp]     # (c_sq, c_exp)  SE fc2, pre-transposed
    w_proj = w_ref[0:c_out, o_pr:o_pr + c_exp]      # (c_out, c_exp) project (out, in)

    # ---- unpack the single packed BN/bias slab (f32) -------------------------
    # columns 0..3: channels-on-sublanes vectors, rows 0..3 / cols 4..: channels-on-lanes rows.
    g1 = p_ref[0:c_exp, 0:1][None]                  # (1, c_exp, 1)
    b1 = p_ref[0:c_exp, 1:2][None]
    g3 = p_ref[0:c_out, 2:3][None]                  # (1, c_out, 1)
    b3 = p_ref[0:c_out, 3:4][None]
    g2 = p_ref[0:1, 4:4 + c_exp][None]              # (1, 1, c_exp)
    b2 = p_ref[1:2, 4:4 + c_exp][None]
    b_se1 = p_ref[2:3, 4:4 + c_sq][None]            # (1, 1, c_sq)
    b_se2 = p_ref[3:4, 4:4 + c_exp][None]           # (1, 1, c_exp)

    x = x_ref[...]                                   # (B, c_in, L) f32

    # ---- expand: Linear(c_in -> c_exp) over channels + BN + Hardswish -------
    # y[b,e,l] = sum_c w_exp[e,c] * x[b,c,l]   (canonical batched matmul, result order natural)
    y = jnp.einsum("bec,bcl->bel",
                   jnp.broadcast_to(w_exp, (B, c_exp, c_in)),
                   x.astype(cdt), preferred_element_type=f32)      # (B, c_exp, L)
    y = _hardswish(_bn_train(y, g1, b1, (0, 2)))

    # ---- depthwise: Linear(L -> L) per (sample, channel) + BN + Hardswish ---
    # z[b,k,e] = sum_l w_dw[k,l] * y[b,e,l]; contraction also flips to tokens layout (B,L,C).
    z = jnp.einsum("bkl,bel->bke",
                   jnp.broadcast_to(w_dw, (B, L, L)),
                   y.astype(cdt), preferred_element_type=f32)      # (B, L, c_exp)
    z = _hardswish(_bn_train(z, g2, b2, (0, 1)))

    # ---- squeeze-excitation: avgpool(L) -> fc1 -> ReLU -> fc2 -> Hardsigmoid -
    pooled = jnp.mean(z, axis=1, keepdims=True)                    # (B, 1, c_exp)
    s = jnp.einsum("bme,beq->bmq", pooled.astype(cdt),
                   jnp.broadcast_to(w_se1t, (B, c_exp, c_sq)),
                   preferred_element_type=f32) + b_se1             # (B, 1, c_sq)
    s = jnp.maximum(s, 0.0)
    s = jnp.einsum("bmq,bqe->bme", s.astype(cdt),
                   jnp.broadcast_to(w_se2t, (B, c_sq, c_exp)),
                   preferred_element_type=f32) + b_se2             # (B, 1, c_exp)
    z = z * _hardsigmoid(s)                                        # broadcast over L

    # ---- project: Linear(c_exp -> c_out) over channels + BN (no activation) -
    # p[b,o,l] = sum_e w_proj[o,e] * z[b,l,e]  -> channels-major result (B, c_out, L)
    p = jnp.einsum("boe,ble->bol",
                   jnp.broadcast_to(w_proj, (B, c_out, c_exp)),
                   z.astype(cdt), preferred_element_type=f32)      # (B, c_out, L)
    p = _bn_train(p, g3, b3, (0, 2))

    if use_res:                                                     # use_res_connect
        p = p + x

    # ---- emit lane-dense (B, c_out*L) channel-major output -------------------
    # Stage the channel-major result in VMEM and copy channel strips into the dense output
    # buffer with static slice copies (avoids relying on a general in-kernel reshape; the
    # HBM writeback DMA sees one dense 128-lane slab).
    stage_ref[...] = p
    for c in range(c_out):
        out_ref[:, c * L:(c + 1) * L] = stage_ref[:, c, :]


def inverted_residual_1d(x, params, *, matmul_dtype=jnp.bfloat16):
    """x: (B, c_in, L) float32, NCL layout (PyTorch convention)."""
    B, c_in, L = x.shape
    c_exp, c_in_w = params["w_exp"].shape
    assert c_in_w == c_in
    c_sq = params["w_se1"].shape[0]
    c_out = params["w_proj"].shape[0]
    f32 = jnp.float32
    x = x.astype(f32)

    # ---- pack the five weight matrices into one slab (one DMA) --------------
    o_dw = c_in
    o_se1 = o_dw + L
    o_se2 = o_se1 + c_sq
    o_pr = o_se2 + c_exp
    w_rows = max(c_exp, L, c_sq, c_out)
    w_cols = o_pr + c_exp
    w_slab = jnp.zeros((w_rows, w_cols), matmul_dtype)
    w_slab = w_slab.at[:c_exp, 0:c_in].set(params["w_exp"].astype(matmul_dtype))
    w_slab = w_slab.at[:L, o_dw:o_dw + L].set(params["w_dw"].astype(matmul_dtype))
    w_slab = w_slab.at[:c_exp, o_se1:o_se1 + c_sq].set(params["w_se1"].T.astype(matmul_dtype))
    w_slab = w_slab.at[:c_sq, o_se2:o_se2 + c_exp].set(params["w_se2"].T.astype(matmul_dtype))
    w_slab = w_slab.at[:c_out, o_pr:o_pr + c_exp].set(params["w_proj"].astype(matmul_dtype))

    # ---- pack the eight per-channel BN/bias vectors into one f32 slab -------
    p_rows = max(c_exp, c_out, 4)
    p_cols = 4 + max(c_exp, c_sq)
    p_slab = jnp.zeros((p_rows, p_cols), f32)
    p_slab = p_slab.at[:c_exp, 0].set(params["g1"].astype(f32))
    p_slab = p_slab.at[:c_exp, 1].set(params["b1"].astype(f32))
    p_slab = p_slab.at[:c_out, 2].set(params["g3"].astype(f32))
    p_slab = p_slab.at[:c_out, 3].set(params["b3"].astype(f32))
    p_slab = p_slab.at[0, 4:4 + c_exp].set(params["g2"].astype(f32))
    p_slab = p_slab.at[1, 4:4 + c_exp].set(params["b2"].astype(f32))
    p_slab = p_slab.at[2, 4:4 + c_sq].set(params["b_se1"].astype(f32))
    p_slab = p_slab.at[3, 4:4 + c_exp].set(params["b_se2"].astype(f32))

    kernel = functools.partial(
        _inv_res_kernel, B=B, L=L, c_in=c_in, c_exp=c_exp, c_sq=c_sq,
        c_out=c_out, use_res=(c_in == c_out))

    out_flat = pl.pallas_call(
        kernel,
        out_shape=jax.ShapeDtypeStruct((B, c_out * L), f32),
        in_specs=[pl.BlockSpec(memory_space=pltpu.MemorySpace.VMEM)] * 3,
        out_specs=pl.BlockSpec(memory_space=pltpu.MemorySpace.VMEM),
        scratch_shapes=[pltpu.VMEM((B, c_out, L), f32)],
    )(x, w_slab, p_slab)

    # (B, c_out*L) channel-major -> (B, c_out, L): pure metadata reshape, no transpose.
    return out_flat.reshape(B, c_out, L)


# ----------------------- pure-JAX f32 reference (PyTorch semantics) ----------
def _bn_ncl_ref(v, gamma, beta):
    mean = jnp.mean(v, axis=(0, 2), keepdims=True)
    var = jnp.mean((v - mean) ** 2, axis=(0, 2), keepdims=True)
    return (v - mean) * jax.lax.rsqrt(var + _BN_EPS) * gamma[None, :, None] + beta[None, :, None]


def inverted_residual_1d_ref(x, params):
    y = jnp.einsum("bcl,ec->bel", x, params["w_exp"])
    y = _hardswish(_bn_ncl_ref(y, params["g1"], params["b1"]))
    z = jnp.einsum("bel,kl->bek", y, params["w_dw"])
    z = _hardswish(_bn_ncl_ref(z, params["g2"], params["b2"]))
    pooled = z.mean(axis=-1)                                       # (B, c_exp)
    s = pooled @ params["w_se1"].T + params["b_se1"]
    s = jnp.maximum(s, 0.0)
    s = s @ params["w_se2"].T + params["b_se2"]
    scale = _hardsigmoid(s)                                        # (B, c_exp)
    z = z * scale[:, :, None]
    p = jnp.einsum("bel,oe->bol", z, params["w_proj"])
    p = _bn_ncl_ref(p, params["g3"], params["b3"])
    return p + x


if __name__ == "__main__":
    # InvertedResidual1d(in=16, exp=32, out=16, kernel=8, use_hs=True, use_se=True, setype='avg')
    B, c_in, c_exp, c_out, L = 4, 16, 32, 16, 8
    c_sq = _make_divisible(c_exp // 4, 8)   # 8

    key = jax.random.PRNGKey(0)
    ks = jax.random.split(key, 16)

    def uinit(k, shape, fan_in):
        bound = 1.0 / (fan_in ** 0.5)
        return jax.random.uniform(k, shape, jnp.float32, -bound, bound)

    params = dict(
        w_exp=uinit(ks[0], (c_exp, c_in), c_in),
        g1=1.0 + 0.1 * jax.random.normal(ks[1], (c_exp,), jnp.float32),
        b1=0.1 * jax.random.normal(ks[2], (c_exp,), jnp.float32),
        w_dw=uinit(ks[3], (L, L), L),
        g2=1.0 + 0.1 * jax.random.normal(ks[4], (c_exp,), jnp.float32),
        b2=0.1 * jax.random.normal(ks[5], (c_exp,), jnp.float32),
        w_se1=uinit(ks[6], (c_sq, c_exp), c_exp),
        b_se1=uinit(ks[7], (c_sq,), c_exp),
        w_se2=uinit(ks[8], (c_exp, c_sq), c_sq),
        b_se2=uinit(ks[9], (c_exp,), c_sq),
        w_proj=uinit(ks[10], (c_out, c_exp), c_exp),
        g3=1.0 + 0.1 * jax.random.normal(ks[11], (c_out,), jnp.float32),
        b3=0.1 * jax.random.normal(ks[12], (c_out,), jnp.float32),
    )

    x = jax.random.normal(ks[15], (B, c_in, L), jnp.float32)
    ref = inverted_residual_1d_ref(x, params)

    # 1) f32 matmul path: exact-semantics check against the f32 reference.
    run_f32 = jax.jit(functools.partial(inverted_residual_1d, matmul_dtype=jnp.float32))
    out_f32 = jax.block_until_ready(run_f32(x, params))
    assert out_f32.shape == (B, c_out, L), out_f32.shape
    assert jnp.allclose(out_f32, ref, atol=2e-3, rtol=2e-3), float(jnp.max(jnp.abs(out_f32 - ref)))

    # 2) bf16 matmul path (default, the optimized configuration).  bf16 operand rounding is
    #    amplified by the training-mode BN renormalization (divide by per-channel std < 1),
    #    so it is checked against the f32 reference at a correspondingly looser tolerance.
    run_bf16 = jax.jit(inverted_residual_1d)
    out_bf16 = jax.block_until_ready(run_bf16(x, params))
    assert out_bf16.shape == (B, c_out, L), out_bf16.shape
    assert jnp.allclose(out_bf16, ref, atol=5e-2, rtol=5e-2), float(jnp.max(jnp.abs(out_bf16 - ref)))

    print("KERNEL_OK")
</pallas_src>

<mosaic_0001>
module attributes {stable_mosaic.version = 11 : i64} {
  func.func @_inv_res_kernel(%arg0: memref<4x16x8xf32, #tpu.memory_space<vmem>>, %arg1: memref<32x96xf32, #tpu.memory_space<vmem>>, %arg2: memref<32x36xf32, #tpu.memory_space<vmem>>, %arg3: memref<4x128xf32, #tpu.memory_space<vmem>>, %arg4: memref<4x16x8xf32, #tpu.memory_space<vmem>>) attributes {dimension_semantics = [], scalar_prefetch = 0 : i64, scratch_operands = 1 : i64, tpu.core_type = #tpu.core_type<tc>} {
    %c0 = arith.constant 0 : index
    %c0_0 = arith.constant 0 : index
    %0 = vector.load %arg1[%c0, %c0_0] : memref<32x96xf32, #tpu.memory_space<vmem>>, vector<32x16xf32>
    %c0_1 = arith.constant 0 : index
    %c16 = arith.constant 16 : index
    %1 = vector.load %arg1[%c0_1, %c16] : memref<32x96xf32, #tpu.memory_space<vmem>>, vector<8x8xf32>
    %c0_2 = arith.constant 0 : index
    %c24 = arith.constant 24 : index
    %2 = vector.load %arg1[%c0_2, %c24] : memref<32x96xf32, #tpu.memory_space<vmem>>, vector<32x8xf32>
    %c0_3 = arith.constant 0 : index
    %c32 = arith.constant 32 : index
    %3 = vector.load %arg1[%c0_3, %c32] : memref<32x96xf32, #tpu.memory_space<vmem>>, vector<8x32xf32>
    %c0_4 = arith.constant 0 : index
    %c64 = arith.constant 64 : index
    %4 = vector.load %arg1[%c0_4, %c64] : memref<32x96xf32, #tpu.memory_space<vmem>>, vector<16x32xf32>
    %c0_5 = arith.constant 0 : index
    %c0_6 = arith.constant 0 : index
    %5 = vector.load %arg2[%c0_5, %c0_6] : memref<32x36xf32, #tpu.memory_space<vmem>>, vector<32x1xf32>
    %6 = vector.shape_cast %5 : vector<32x1xf32> to vector<1x32x1xf32>
    %c0_7 = arith.constant 0 : index
    %c1 = arith.constant 1 : index
    %7 = vector.load %arg2[%c0_7, %c1] : memref<32x36xf32, #tpu.memory_space<vmem>>, vector<32x1xf32>
    %8 = vector.shape_cast %7 : vector<32x1xf32> to vector<1x32x1xf32>
    %c0_8 = arith.constant 0 : index
    %c2 = arith.constant 2 : index
    %9 = vector.load %arg2[%c0_8, %c2] : memref<32x36xf32, #tpu.memory_space<vmem>>, vector<16x1xf32>
    %10 = vector.shape_cast %9 : vector<16x1xf32> to vector<1x16x1xf32>
    %c0_9 = arith.constant 0 : index
    %c3 = arith.constant 3 : index
    %11 = vector.load %arg2[%c0_9, %c3] : memref<32x36xf32, #tpu.memory_space<vmem>>, vector<16x1xf32>
    %12 = vector.shape_cast %11 : vector<16x1xf32> to vector<1x16x1xf32>
    %c0_10 = arith.constant 0 : index
    %c4 = arith.constant 4 : index
    %13 = vector.load %arg2[%c0_10, %c4] : memref<32x36xf32, #tpu.memory_space<vmem>>, vector<1x32xf32>
    %14 = vector.shape_cast %13 : vector<1x32xf32> to vector<1x1x32xf32>
    %c1_11 = arith.constant 1 : index
    %c4_12 = arith.constant 4 : index
    %15 = vector.load %arg2[%c1_11, %c4_12] : memref<32x36xf32, #tpu.memory_space<vmem>>, vector<1x32xf32>
    %16 = vector.shape_cast %15 : vector<1x32xf32> to vector<1x1x32xf32>
    %c2_13 = arith.constant 2 : index
    %c4_14 = arith.constant 4 : index
    %17 = vector.load %arg2[%c2_13, %c4_14] : memref<32x36xf32, #tpu.memory_space<vmem>>, vector<1x8xf32>
    %18 = vector.shape_cast %17 : vector<1x8xf32> to vector<1x1x8xf32>
    %c3_15 = arith.constant 3 : index
    %c4_16 = arith.constant 4 : index
    %19 = vector.load %arg2[%c3_15, %c4_16] : memref<32x36xf32, #tpu.memory_space<vmem>>, vector<1x32xf32>
    %20 = vector.shape_cast %19 : vector<1x32xf32> to vector<1x1x32xf32>
    %c0_17 = arith.constant 0 : index
    %c0_18 = arith.constant 0 : index
    %c0_19 = arith.constant 0 : index
    %21 = vector.load %arg0[%c0_17, %c0_18, %c0_19] : memref<4x16x8xf32, #tpu.memory_space<vmem>>, vector<4x16x8xf32>
    %22 = vector.shape_cast %0 : vector<32x16xf32> to vector<1x32x16xf32>
    %23 = vector.broadcast %22 : vector<1x32x16xf32> to vector<4x32x16xf32>
    "tpu.trace_start"() <{level = 10 : i32, message = "bec,bcl->bel"}> : () -> ()
    %cst = arith.constant dense<0.000000e+00> : vector<4x32x8xf32>
    %24 = tpu.matmul %23, %21, %cst {dimension_numbers = #tpu.dot_dimension_numbers<[2], [1], [1], [2], [0, 0, 0, 1, 1, 2], [0], [0]>} : vector<4x32x16xf32>, vector<4x16x8xf32>, vector<4x32x8xf32> -> vector<4x32x8xf32>
    "tpu.trace_stop"() : () -> ()
    %25 = arith.mulf %24, %24 : vector<4x32x8xf32>
    %cst_20 = arith.constant dense<0.000000e+00> : vector<32x8xf32>
    %26 = vector.multi_reduction <add>, %24, %cst_20 [0] : vector<4x32x8xf32> to vector<32x8xf32>
    %27 = vector.shape_cast %26 : vector<32x8xf32> to vector<1x32x8xf32>
    %cst_21 = arith.constant dense<0.000000e+00> : vector<32x8xf32>
    %28 = vector.multi_reduction <add>, %25, %cst_21 [0] : vector<4x32x8xf32> to vector<32x8xf32>
    %29 = vector.shape_cast %28 : vector<32x8xf32> to vector<1x32x8xf32>
    %cst_22 = arith.constant dense<0.000000e+00> : vector<1x32xf32>
    %30 = vector.multi_reduction <add>, %27, %cst_22 [2] : vector<1x32x8xf32> to vector<1x32xf32>
    %31 = vector.shape_cast %30 : vector<1x32xf32> to vector<1x32x1xf32>
    %cst_23 = arith.constant dense<0.000000e+00> : vector<1x32xf32>
    %32 = vector.multi_reduction <add>, %29, %cst_23 [2] : vector<1x32x8xf32> to vector<1x32xf32>
    %33 = vector.shape_cast %32 : vector<1x32xf32> to vector<1x32x1xf32>
    %cst_24 = arith.constant 3.125000e-02 : f32
    %34 = vector.broadcast %cst_24 : f32 to vector<1x32x1xf32>
    %35 = arith.mulf %31, %34 : vector<1x32x1xf32>
    %cst_25 = arith.constant 3.125000e-02 : f32
    %36 = vector.broadcast %cst_25 : f32 to vector<1x32x1xf32>
    %37 = arith.mulf %33, %36 : vector<1x32x1xf32>
    %38 = arith.mulf %35, %35 : vector<1x32x1xf32>
    %39 = arith.subf %37, %38 : vector<1x32x1xf32>
    %40 = vector.broadcast %35 : vector<1x32x1xf32> to vector<4x32x8xf32>
    %41 = arith.subf %24, %40 : vector<4x32x8xf32>
    %cst_26 = arith.constant 9.99999974E-6 : f32
    %42 = vector.broadcast %cst_26 : f32 to vector<1x32x1xf32>
    %43 = arith.addf %39, %42 : vector<1x32x1xf32>
    %44 = math.rsqrt %43 : vector<1x32x1xf32>
    %45 = arith.mulf %44, %6 : vector<1x32x1xf32>
    %46 = vector.broadcast %45 : vector<1x32x1xf32> to vector<4x32x8xf32>
    %47 = arith.mulf %41, %46 : vector<4x32x8xf32>
    %48 = vector.broadcast %8 : vector<1x32x1xf32> to vector<4x32x8xf32>
    %49 = arith.addf %47, %48 : vector<4x32x8xf32>
    %cst_27 = arith.constant 3.000000e+00 : f32
    %50 = vector.broadcast %cst_27 : f32 to vector<4x32x8xf32>
    %51 = arith.addf %49, %50 : vector<4x32x8xf32>
    %cst_28 = arith.constant 0.000000e+00 : f32
    %cst_29 = arith.constant 6.000000e+00 : f32
    %52 = vector.broadcast %cst_28 : f32 to vector<4x32x8xf32>
    %53 = arith.maximumf %52, %51 : vector<4x32x8xf32>
    %54 = vector.broadcast %cst_29 : f32 to vector<4x32x8xf32>
    %55 = arith.minimumf %54, %53 : vector<4x32x8xf32>
    %56 = arith.mulf %49, %55 : vector<4x32x8xf32>
    %cst_30 = arith.constant 0.166666672 : f32
    %57 = vector.broadcast %cst_30 : f32 to vector<4x32x8xf32>
    %58 = arith.mulf %56, %57 : vector<4x32x8xf32>
    %59 = vector.shape_cast %1 : vector<8x8xf32> to vector<1x8x8xf32>
    %60 = vector.broadcast %59 : vector<1x8x8xf32> to vector<4x8x8xf32>
    "tpu.trace_start"() <{level = 10 : i32, message = "bkl,bel->bke"}> : () -> ()
    %cst_31 = arith.constant dense<0.000000e+00> : vector<4x8x32xf32>
    %61 = tpu.matmul %60, %58, %cst_31 {dimension_numbers = #tpu.dot_dimension_numbers<[2], [2], [1], [1], [0, 0, 0, 1, 1, 1], [0], [0]>} : vector<4x8x8xf32>, vector<4x32x8xf32>, vector<4x8x32xf32> -> vector<4x8x32xf32>
    "tpu.trace_stop"() : () -> ()
    %62 = arith.mulf %61, %61 : vector<4x8x32xf32>
    %cst_32 = arith.constant dense<0.000000e+00> : vector<8x32xf32>
    %63 = vector.multi_reduction <add>, %61, %cst_32 [0] : vector<4x8x32xf32> to vector<8x32xf32>
    %64 = vector.shape_cast %63 : vector<8x32xf32> to vector<1x8x32xf32>
    %cst_33 = arith.constant dense<0.000000e+00> : vector<8x32xf32>
    %65 = vector.multi_reduction <add>, %62, %cst_33 [0] : vector<4x8x32xf32> to vector<8x32xf32>
    %66 = vector.shape_cast %65 : vector<8x32xf32> to vector<1x8x32xf32>
    %cst_34 = arith.constant dense<0.000000e+00> : vector<1x32xf32>
    %67 = vector.multi_reduction <add>, %64, %cst_34 [1] : vector<1x8x32xf32> to vector<1x32xf32>
    %68 = vector.shape_cast %67 : vector<1x32xf32> to vector<1x1x32xf32>
    %cst_35 = arith.constant dense<0.000000e+00> : vector<1x32xf32>
    %69 = vector.multi_reduction <add>, %66, %cst_35 [1] : vector<1x8x32xf32> to vector<1x32xf32>
    %70 = vector.shape_cast %69 : vector<1x32xf32> to vector<1x1x32xf32>
    %cst_36 = arith.constant 3.125000e-02 : f32
    %71 = vector.broadcast %cst_36 : f32 to vector<1x1x32xf32>
    %72 = arith.mulf %68, %71 : vector<1x1x32xf32>
    %cst_37 = arith.constant 3.125000e-02 : f32
    %73 = vector.broadcast %cst_37 : f32 to vector<1x1x32xf32>
    %74 = arith.mulf %70, %73 : vector<1x1x32xf32>
    %75 = arith.mulf %72, %72 : vector<1x1x32xf32>
    %76 = arith.subf %74, %75 : vector<1x1x32xf32>
    %77 = vector.broadcast %72 : vector<1x1x32xf32> to vector<4x8x32xf32>
    %78 = arith.subf %61, %77 : vector<4x8x32xf32>
    %cst_38 = arith.constant 9.99999974E-6 : f32
    %79 = vector.broadcast %cst_38 : f32 to vector<1x1x32xf32>
    %80 = arith.addf %76, %79 : vector<1x1x32xf32>
    %81 = math.rsqrt %80 : vector<1x1x32xf32>
    %82 = arith.mulf %81, %14 : vector<1x1x32xf32>
    %83 = vector.broadcast %82 : vector<1x1x32xf32> to vector<4x8x32xf32>
    %84 = arith.mulf %78, %83 : vector<4x8x32xf32>
    %85 = vector.broadcast %16 : vector<1x1x32xf32> to vector<4x8x32xf32>
    %86 = arith.addf %84, %85 : vector<4x8x32xf32>
    %cst_39 = arith.constant 3.000000e+00 : f32
    %87 = vector.broadcast %cst_39 : f32 to vector<4x8x32xf32>
    %88 = arith.addf %86, %87 : vector<4x8x32xf32>
    %cst_40 = arith.constant 0.000000e+00 : f32
    %cst_41 = arith.constant 6.000000e+00 : f32
    %89 = vector.broadcast %cst_40 : f32 to vector<4x8x32xf32>
    %90 = arith.maximumf %89, %88 : vector<4x8x32xf32>
    %91 = vector.broadcast %cst_41 : f32 to vector<4x8x32xf32>
    %92 = arith.minimumf %91, %90 : vector<4x8x32xf32>
    %93 = arith.mulf %86, %92 : vector<4x8x32xf32>
    %cst_42 = arith.constant 0.166666672 : f32
    %94 = vector.broadcast %cst_42 : f32 to vector<4x8x32xf32>
    %95 = arith.mulf %93, %94 : vector<4x8x32xf32>
    %cst_43 = arith.constant dense<0.000000e+00> : vector<4x32xf32>
    %96 = vector.multi_reduction <add>, %95, %cst_43 [1] : vector<4x8x32xf32> to vector<4x32xf32>
    %97 = vector.shape_cast %96 : vector<4x32xf32> to vector<4x1x32xf32>
    %cst_44 = arith.constant 8.000000e+00 : f32
    %98 = vector.broadcast %cst_44 : f32 to vector<4x1x32xf32>
    %99 = arith.divf %97, %98 : vector<4x1x32xf32>
    %100 = vector.shape_cast %2 : vector<32x8xf32> to vector<1x32x8xf32>
    %101 = vector.broadcast %100 : vector<1x32x8xf32> to vector<4x32x8xf32>
    "tpu.trace_start"() <{level = 10 : i32, message = "bme,beq->bmq"}> : () -> ()
    %cst_45 = arith.constant dense<0.000000e+00> : vector<4x1x8xf32>
    %102 = tpu.matmul %99, %101, %cst_45 {dimension_numbers = #tpu.dot_dimension_numbers<[2], [1], [1], [2], [0, 0, 0, 1, 1, 2], [0], [0]>} : vector<4x1x32xf32>, vector<4x32x8xf32>, vector<4x1x8xf32> -> vector<4x1x8xf32>
    "tpu.trace_stop"() : () -> ()
    %103 = vector.broadcast %18 : vector<1x1x8xf32> to vector<4x1x8xf32>
    %104 = arith.addf %102, %103 : vector<4x1x8xf32>
    %cst_46 = arith.constant 0.000000e+00 : f32
    %105 = vector.broadcast %cst_46 : f32 to vector<4x1x8xf32>
    %106 = arith.maximumf %104, %105 : vector<4x1x8xf32>
    %107 = vector.shape_cast %3 : vector<8x32xf32> to vector<1x8x32xf32>
    %108 = vector.broadcast %107 : vector<1x8x32xf32> to vector<4x8x32xf32>
    "tpu.trace_start"() <{level = 10 : i32, message = "bmq,bqe->bme"}> : () -> ()
    %cst_47 = arith.constant dense<0.000000e+00> : vector<4x1x32xf32>
    %109 = tpu.matmul %106, %108, %cst_47 {dimension_numbers = #tpu.dot_dimension_numbers<[2], [1], [1], [2], [0, 0, 0, 1, 1, 2], [0], [0]>} : vector<4x1x8xf32>, vector<4x8x32xf32>, vector<4x1x32xf32> -> vector<4x1x32xf32>
    "tpu.trace_stop"() : () -> ()
    %110 = vector.broadcast %20 : vector<1x1x32xf32> to vector<4x1x32xf32>
    %111 = arith.addf %109, %110 : vector<4x1x32xf32>
    %cst_48 = arith.constant 3.000000e+00 : f32
    %112 = vector.broadcast %cst_48 : f32 to vector<4x1x32xf32>
    %113 = arith.addf %111, %112 : vector<4x1x32xf32>
    %cst_49 = arith.constant 0.000000e+00 : f32
    %cst_50 = arith.constant 6.000000e+00 : f32
    %114 = vector.broadcast %cst_49 : f32 to vector<4x1x32xf32>
    %115 = arith.maximumf %114, %113 : vector<4x1x32xf32>
    %116 = vector.broadcast %cst_50 : f32 to vector<4x1x32xf32>
    %117 = arith.minimumf %116, %115 : vector<4x1x32xf32>
    %cst_51 = arith.constant 0.166666672 : f32
    %118 = vector.broadcast %cst_51 : f32 to vector<4x1x32xf32>
    %119 = arith.mulf %117, %118 : vector<4x1x32xf32>
    %120 = vector.broadcast %119 : vector<4x1x32xf32> to vector<4x8x32xf32>
    %121 = arith.mulf %95, %120 : vector<4x8x32xf32>
    %122 = vector.shape_cast %4 : vector<16x32xf32> to vector<1x16x32xf32>
    %123 = vector.broadcast %122 : vector<1x16x32xf32> to vector<4x16x32xf32>
    "tpu.trace_start"() <{level = 10 : i32, message = "boe,ble->bol"}> : () -> ()
    %cst_52 = arith.constant dense<0.000000e+00> : vector<4x16x8xf32>
    %124 = tpu.matmul %123, %121, %cst_52 {dimension_numbers = #tpu.dot_dimension_numbers<[2], [2], [1], [1], [0, 0, 0, 1, 1, 1], [0], [0]>} : vector<4x16x32xf32>, vector<4x8x32xf32>, vector<4x16x8xf32> -> vector<4x16x8xf32>
    "tpu.trace_stop"() : () -> ()
    %125 = arith.mulf %124, %124 : vector<4x16x8xf32>
    %cst_53 = arith.constant dense<0.000000e+00> : vector<16x8xf32>
    %126 = vector.multi_reduction <add>, %124, %cst_53 [0] : vector<4x16x8xf32> to vector<16x8xf32>
    %127 = vector.shape_cast %126 : vector<16x8xf32> to vector<1x16x8xf32>
    %cst_54 = arith.constant dense<0.000000e+00> : vector<16x8xf32>
    %128 = vector.multi_reduction <add>, %125, %cst_54 [0] : vector<4x16x8xf32> to vector<16x8xf32>
    %129 = vector.shape_cast %128 : vector<16x8xf32> to vector<1x16x8xf32>
    %cst_55 = arith.constant dense<0.000000e+00> : vector<1x16xf32>
    %130 = vector.multi_reduction <add>, %127, %cst_55 [2] : vector<1x16x8xf32> to vector<1x16xf32>
    %131 = vector.shape_cast %130 : vector<1x16xf32> to vector<1x16x1xf32>
    %cst_56 = arith.constant dense<0.000000e+00> : vector<1x16xf32>
    %132 = vector.multi_reduction <add>, %129, %cst_56 [2] : vector<1x16x8xf32> to vector<1x16xf32>
    %133 = vector.shape_cast %132 : vector<1x16xf32> to vector<1x16x1xf32>
    %cst_57 = arith.constant 3.125000e-02 : f32
    %134 = vector.broadcast %cst_57 : f32 to vector<1x16x1xf32>
    %135 = arith.mulf %131, %134 : vector<1x16x1xf32>
    %cst_58 = arith.constant 3.125000e-02 : f32
    %136 = vector.broadcast %cst_58 : f32 to vector<1x16x1xf32>
    %137 = arith.mulf %133, %136 : vector<1x16x1xf32>
    %138 = arith.mulf %135, %135 : vector<1x16x1xf32>
    %139 = arith.subf %137, %138 : vector<1x16x1xf32>
    %140 = vector.broadcast %135 : vector<1x16x1xf32> to vector<4x16x8xf32>
    %141 = arith.subf %124, %140 : vector<4x16x8xf32>
    %cst_59 = arith.constant 9.99999974E-6 : f32
    %142 = vector.broadcast %cst_59 : f32 to vector<1x16x1xf32>
    %143 = arith.addf %139, %142 : vector<1x16x1xf32>
    %144 = math.rsqrt %143 : vector<1x16x1xf32>
    %145 = arith.mulf %144, %10 : vector<1x16x1xf32>
    %146 = vector.broadcast %145 : vector<1x16x1xf32> to vector<4x16x8xf32>
    %147 = arith.mulf %141, %146 : vector<4x16x8xf32>
    %148 = vector.broadcast %12 : vector<1x16x1xf32> to vector<4x16x8xf32>
    %149 = arith.addf %147, %148 : vector<4x16x8xf32>
    %150 = arith.addf %149, %21 : vector<4x16x8xf32>
    %c0_60 = arith.constant 0 : index
    %c0_61 = arith.constant 0 : index
    %c0_62 = arith.constant 0 : index
    %151 = vector.load %arg4[%c0_60, %c0_61, %c0_62] : memref<4x16x8xf32, #tpu.memory_space<vmem>>, vector<4x16x8xf32>
    tpu.vector_store %arg4[%c0_60, %c0_61, %c0_62], %150 {strides = array<i32>} : memref<4x16x8xf32, #tpu.memory_space<vmem>>, vector<4x16x8xf32>,
    %c0_63 = arith.constant 0 : index
    %c0_64 = arith.constant 0 : index
    %c0_65 = arith.constant 0 : index
    %152 = vector.load %arg4[%c0_63, %c0_64, %c0_65] : memref<4x16x8xf32, #tpu.memory_space<vmem>>, vector<4x1x8xf32>
    %153 = vector.shape_cast %152 : vector<4x1x8xf32> to vector<4x8xf32>
    %c0_66 = arith.constant 0 : index
    %c0_67 = arith.constant 0 : index
    %154 = vector.load %arg3[%c0_66, %c0_67] : memref<4x128xf32, #tpu.memory_space<vmem>>, vector<4x8xf32>
    tpu.vector_store %arg3[%c0_66, %c0_67], %153 {strides = array<i32>} : memref<4x128xf32, #tpu.memory_space<vmem>>, vector<4x8xf32>,
    %c0_68 = arith.constant 0 : index
    %c1_69 = arith.constant 1 : index
    %c0_70 = arith.constant 0 : index
    %155 = vector.load %arg4[%c0_68, %c1_69, %c0_70] : memref<4x16x8xf32, #tpu.memory_space<vmem>>, vector<4x1x8xf32>
    %156 = vector.shape_cast %155 : vector<4x1x8xf32> to vector<4x8xf32>
    %c0_71 = arith.constant 0 : index
    %c8 = arith.constant 8 : index
    %157 = vector.load %arg3[%c0_71, %c8] : memref<4x128xf32, #tpu.memory_space<vmem>>, vector<4x8xf32>
    tpu.vector_store %arg3[%c0_71, %c8], %156 {strides = array<i32>} : memref<4x128xf32, #tpu.memory_space<vmem>>, vector<4x8xf32>,
    %c0_72 = arith.constant 0 : index
    %c2_73 = arith.constant 2 : index
    %c0_74 = arith.constant 0 : index
    %158 = vector.load %arg4[%c0_72, %c2_73, %c0_74] : memref<4x16x8xf32, #tpu.memory_space<vmem>>, vector<4x1x8xf32>
    %159 = vector.shape_cast %158 : vector<4x1x8xf32> to vector<4x8xf32>
    %c0_75 = arith.constant 0 : index
    %c16_76 = arith.constant 16 : index
    %160 = vector.load %arg3[%c0_75, %c16_76] : memref<4x128xf32, #tpu.memory_space<vmem>>, vector<4x8xf32>
    tpu.vector_store %arg3[%c0_75, %c16_76], %159 {strides = array<i32>} : memref<4x128xf32, #tpu.memory_space<vmem>>, vector<4x8xf32>,
    %c0_77 = arith.constant 0 : index
    %c3_78 = arith.constant 3 : index
    %c0_79 = arith.constant 0 : index
    %161 = vector.load %arg4[%c0_77, %c3_78, %c0_79] : memref<4x16x8xf32, #tpu.memory_space<vmem>>, vector<4x1x8xf32>
    %162 = vector.shape_cast %161 : vector<4x1x8xf32> to vector<4x8xf32>
    %c0_80 = arith.constant 0 : index
    %c24_81 = arith.constant 24 : index
    %163 = vector.load %arg3[%c0_80, %c24_81] : memref<4x128xf32, #tpu.memory_space<vmem>>, vector<4x8xf32>
    tpu.vector_store %arg3[%c0_80, %c24_81], %162 {strides = array<i32>} : memref<4x128xf32, #tpu.memory_space<vmem>>, vector<4x8xf32>,
    %c0_82 = arith.constant 0 : index
    %c4_83 = arith.constant 4 : index
    %c0_84 = arith.constant 0 : index
    %164 = vector.load %arg4[%c0_82, %c4_83, %c0_84] : memref<4x16x8xf32, #tpu.memory_space<vmem>>, vector<4x1x8xf32>
    %165 = vector.shape_cast %164 : vector<4x1x8xf32> to vector<4x8xf32>
    %c0_85 = arith.constant 0 : index
    %c32_86 = arith.constant 32 : index
    %166 = vector.load %arg3[%c0_85, %c32_86] : memref<4x128xf32, #tpu.memory_space<vmem>>, vector<4x8xf32>
    tpu.vector_store %arg3[%c0_85, %c32_86], %165 {strides = array<i32>} : memref<4x128xf32, #tpu.memory_space<vmem>>, vector<4x8xf32>,
    %c0_87 = arith.constant 0 : index
    %c5 = arith.constant 5 : index
    %c0_88 = arith.constant 0 : index
    %167 = vector.load %arg4[%c0_87, %c5, %c0_88] : memref<4x16x8xf32, #tpu.memory_space<vmem>>, vector<4x1x8xf32>
    %168 = vector.shape_cast %167 : vector<4x1x8xf32> to vector<4x8xf32>
    %c0_89 = arith.constant 0 : index
    %c40 = arith.constant 40 : index
    %169 = vector.load %arg3[%c0_89, %c40] : memref<4x128xf32, #tpu.memory_space<vmem>>, vector<4x8xf32>
    tpu.vector_store %arg3[%c0_89, %c40], %168 {strides = array<i32>} : memref<4x128xf32, #tpu.memory_space<vmem>>, vector<4x8xf32>,
    %c0_90 = arith.constant 0 : index
    %c6 = arith.constant 6 : index
    %c0_91 = arith.constant 0 : index
    %170 = vector.load %arg4[%c0_90, %c6, %c0_91] : memref<4x16x8xf32, #tpu.memory_space<vmem>>, vector<4x1x8xf32>
    %171 = vector.shape_cast %170 : vector<4x1x8xf32> to vector<4x8xf32>
    %c0_92 = arith.constant 0 : index
    %c48 = arith.constant 48 : index
    %172 = vector.load %arg3[%c0_92, %c48] : memref<4x128xf32, #tpu.memory_space<vmem>>, vector<4x8xf32>
    tpu.vector_store %arg3[%c0_92, %c48], %171 {strides = array<i32>} : memref<4x128xf32, #tpu.memory_space<vmem>>, vector<4x8xf32>,
    %c0_93 = arith.constant 0 : index
    %c7 = arith.constant 7 : index
    %c0_94 = arith.constant 0 : index
    %173 = vector.load %arg4[%c0_93, %c7, %c0_94] : memref<4x16x8xf32, #tpu.memory_space<vmem>>, vector<4x1x8xf32>
    %174 = vector.shape_cast %173 : vector<4x1x8xf32> to vector<4x8xf32>
    %c0_95 = arith.constant 0 : index
    %c56 = arith.constant 56 : index
    %175 = vector.load %arg3[%c0_95, %c56] : memref<4x128xf32, #tpu.memory_space<vmem>>, vector<4x8xf32>
    tpu.vector_store %arg3[%c0_95, %c56], %174 {strides = array<i32>} : memref<4x128xf32, #tpu.memory_space<vmem>>, vector<4x8xf32>,
    %c0_96 = arith.constant 0 : index
    %c8_97 = arith.constant 8 : index
    %c0_98 = arith.constant 0 : index
    %176 = vector.load %arg4[%c0_96, %c8_97, %c0_98] : memref<4x16x8xf32, #tpu.memory_space<vmem>>, vector<4x1x8xf32>
    %177 = vector.shape_cast %176 : vector<4x1x8xf32> to vector<4x8xf32>
    %c0_99 = arith.constant 0 : index
    %c64_100 = arith.constant 64 : index
    %178 = vector.load %arg3[%c0_99, %c64_100] : memref<4x128xf32, #tpu.memory_space<vmem>>, vector<4x8xf32>
    tpu.vector_store %arg3[%c0_99, %c64_100], %177 {strides = array<i32>} : memref<4x128xf32, #tpu.memory_space<vmem>>, vector<4x8xf32>,
    %c0_101 = arith.constant 0 : index
    %c9 = arith.constant 9 : index
    %c0_102 = arith.constant 0 : index
    %179 = vector.load %arg4[%c0_101, %c9, %c0_102] : memref<4x16x8xf32, #tpu.memory_space<vmem>>, vector<4x1x8xf32>
    %180 = vector.shape_cast %179 : vector<4x1x8xf32> to vector<4x8xf32>
    %c0_103 = arith.constant 0 : index
    %c72 = arith.constant 72 : index
    %181 = vector.load %arg3[%c0_103, %c72] : memref<4x128xf32, #tpu.memory_space<vmem>>, vector<4x8xf32>
    tpu.vector_store %arg3[%c0_103, %c72], %180 {strides = array<i32>} : memref<4x128xf32, #tpu.memory_space<vmem>>, vector<4x8xf32>,
    %c0_104 = arith.constant 0 : index
    %c10 = arith.constant 10 : index
    %c0_105 = arith.constant 0 : index
    %182 = vector.load %arg4[%c0_104, %c10, %c0_105] : memref<4x16x8xf32, #tpu.memory_space<vmem>>, vector<4x1x8xf32>
    %183 = vector.shape_cast %182 : vector<4x1x8xf32> to vector<4x8xf32>
    %c0_106 = arith.constant 0 : index
    %c80 = arith.constant 80 : index
    %184 = vector.load %arg3[%c0_106, %c80] : memref<4x128xf32, #tpu.memory_space<vmem>>, vector<4x8xf32>
    tpu.vector_store %arg3[%c0_106, %c80], %183 {strides = array<i32>} : memref<4x128xf32, #tpu.memory_space<vmem>>, vector<4x8xf32>,
    %c0_107 = arith.constant 0 : index
    %c11 = arith.constant 11 : index
    %c0_108 = arith.constant 0 : index
    %185 = vector.load %arg4[%c0_107, %c11, %c0_108] : memref<4x16x8xf32, #tpu.memory_space<vmem>>, vector<4x1x8xf32>
    %186 = vector.shape_cast %185 : vector<4x1x8xf32> to vector<4x8xf32>
    %c0_109 = arith.constant 0 : index
    %c88 = arith.constant 88 : index
    %187 = vector.load %arg3[%c0_109, %c88] : memref<4x128xf32, #tpu.memory_space<vmem>>, vector<4x8xf32>
    tpu.vector_store %arg3[%c0_109, %c88], %186 {strides = array<i32>} : memref<4x128xf32, #tpu.memory_space<vmem>>, vector<4x8xf32>,
    %c0_110 = arith.constant 0 : index
    %c12 = arith.constant 12 : index
    %c0_111 = arith.constant 0 : index
    %188 = vector.load %arg4[%c0_110, %c12, %c0_111] : memref<4x16x8xf32, #tpu.memory_space<vmem>>, vector<4x1x8xf32>
    %189 = vector.shape_cast %188 : vector<4x1x8xf32> to vector<4x8xf32>
    %c0_112 = arith.constant 0 : index
    %c96 = arith.constant 96 : index
    %190 = vector.load %arg3[%c0_112, %c96] : memref<4x128xf32, #tpu.memory_space<vmem>>, vector<4x8xf32>
    tpu.vector_store %arg3[%c0_112, %c96], %189 {strides = array<i32>} : memref<4x128xf32, #tpu.memory_space<vmem>>, vector<4x8xf32>,
    %c0_113 = arith.constant 0 : index
    %c13 = arith.constant 13 : index
    %c0_114 = arith.constant 0 : index
    %191 = vector.load %arg4[%c0_113, %c13, %c0_114] : memref<4x16x8xf32, #tpu.memory_space<vmem>>, vector<4x1x8xf32>
    %192 = vector.shape_cast %191 : vector<4x1x8xf32> to vector<4x8xf32>
    %c0_115 = arith.constant 0 : index
    %c104 = arith.constant 104 : index
    %193 = vector.load %arg3[%c0_115, %c104] : memref<4x128xf32, #tpu.memory_space<vmem>>, vector<4x8xf32>
    tpu.vector_store %arg3[%c0_115, %c104], %192 {strides = array<i32>} : memref<4x128xf32, #tpu.memory_space<vmem>>, vector<4x8xf32>,
    %c0_116 = arith.constant 0 : index
    %c14 = arith.constant 14 : index
    %c0_117 = arith.constant 0 : index
    %194 = vector.load %arg4[%c0_116, %c14, %c0_117] : memref<4x16x8xf32, #tpu.memory_space<vmem>>, vector<4x1x8xf32>
    %195 = vector.shape_cast %194 : vector<4x1x8xf32> to vector<4x8xf32>
    %c0_118 = arith.constant 0 : index
    %c112 = arith.constant 112 : index
    %196 = vector.load %arg3[%c0_118, %c112] : memref<4x128xf32, #tpu.memory_space<vmem>>, vector<4x8xf32>
    tpu.vector_store %arg3[%c0_118, %c112], %195 {strides = array<i32>} : memref<4x128xf32, #tpu.memory_space<vmem>>, vector<4x8xf32>,
    %c0_119 = arith.constant 0 : index
    %c15 = arith.constant 15 : index
    %c0_120 = arith.constant 0 : index
    %197 = vector.load %arg4[%c0_119, %c15, %c0_120] : memref<4x16x8xf32, #tpu.memory_space<vmem>>, vector<4x1x8xf32>
    %198 = vector.shape_cast %197 : vector<4x1x8xf32> to vector<4x8xf32>
    %c0_121 = arith.constant 0 : index
    %c120 = arith.constant 120 : index
    %199 = vector.load %arg3[%c0_121, %c120] : memref<4x128xf32, #tpu.memory_space<vmem>>, vector<4x8xf32>
    tpu.vector_store %arg3[%c0_121, %c120], %198 {strides = array<i32>} : memref<4x128xf32, #tpu.memory_space<vmem>>, vector<4x8xf32>,
    return
  }
}

</mosaic_0001>

<bundles_post_ra>
// kernel: inverted_residual_1d.1
= control target key start
LH: loop header
LB: loop body
LE: loop exit
PB: predicated region body
PF: predicated region fallthrough
CT: control target
= control target key end

     0   :  { %vm34_vm0 = vcmask 130048   ;;  %vm403_vm1 = vcmask 64512   ;;  %s2900_s17 = smov 112   ;;  %vm2901_vm2 = vmmov 0   ;;  %s2902_s22 = smov 124   ;;  %vm1016_vm3 = vcmask 261120   ;;  %s3640_s0 = inlined_call_operand.vmem [shape: f32[4,16,8], index: 0, kind: input, shape index: {}]   ;;  %s3641_s1 = inlined_call_operand.vmem [shape: f32[32,96], index: 1, kind: input, shape index: {}]   ;;  %s3642_s2 = inlined_call_operand.vmem [shape: f32[32,36], index: 2, kind: input, shape index: {}]   ;;  %s3643_s3 = inlined_call_operand.vmem [shape: f32[4,128], index: 3, kind: output, shape index: {}]  }
   0x1   :  { %v27_v0 = vld [vmem:[%s3640_s0 + $0x8] sm:$0xff]  ;;  %v29_v1 = vld [vmem:[%s3640_s0 + $0x18] sm:$0xff]  ;;  %v26_v2 = vld [vmem:[%s3640_s0] sm:$0xff]  ;;  %s2903_s23 = smov 104   ;;  %s2904_s26 = smov 96   ;;  %vm2229_vm4 = vcmask 1041409  }
   0x2   :  { %2670 = vmatprep.subr.mxu0 %v27_v0  ;;  %2680 = vmatprep.subr.mxu1 %v29_v1  ;;  %v28_v3 = vld [vmem:[%s3640_s0 + $0x10] sm:$0xff]  ;;  %v2954_v4 = vld [vmem:[%s3641_s1] sm:$0xff]  ;;  %v2959_v5 = vld [vmem:[%s3641_s1 + $0x8] sm:$0xff]  ;;  %s2905_s4 = smov 64   ;;  %vm2232_vm5 = vcmask 1042434   ;;  %vm2235_vm6 = vcmask 1043459  }
   0x3   :  { %2671 = vmatpush3.msra.mxu0 %v27_v0  ;;  %2681 = vmatpush3.msra.mxu1 %v29_v1  ;;  %v31_v6 = vld [vmem:[%s3640_s0 + $0x28] sm:$0xff]  ;;  %v33_v7 = vld [vmem:[%s3640_s0 + $0x38] sm:$0xff]  ;;  %v2974_v8 = vld [vmem:[%s3641_s1 + $0x10] sm:$0xff]  ;;  %s2909_s28 = smov 88   ;;  %s2910_s29 = smov 80   ;;  %vm2238_vm7 = vcmask 60416  }
   0x4   :  { %2672 = vmatprep.subr.mxu0 %v26_v2  ;;  %2682 = vmatprep.subr.mxu1 %v28_v3  ;;  %v2983_v9 = vld [vmem:[%s3641_s1 + $0x18] sm:$0xff]  ;;  %v30_v10 = vld [vmem:[%s3640_s0 + $0x20] sm:$0xff]  ;;  %v32_v11 = vld [vmem:[%s3640_s0 + $0x30] sm:$0xff]  ;;  %s2911_s30 = smov 8   ;;  %s2913_s5 = smov 16   ;;  %vm2257_vm8 = vcmask 126016  }
   0x5   :  { %2673 = vmatpush3.msra.mxu0 %v26_v2  ;;  %2674 = vmatprep.mubr.msk.f32.mxu0 %vm34_vm0, %v2954_v4  ;;  %s2914_s6 = smov 24   ;;  %s2917_s8 = smov 56   ;;  %vm2276_vm9 = vcmask 191616   ;;  %vm2295_vm10 = vcmask 257216   ;;  %vm2314_vm11 = vcmask 322816   ;;  %vm2333_vm12 = vcmask 388416  }
   0x6   :  { %2683 = vmatpush3.msra.mxu1 %v28_v3  ;;  %2684 = vmatprep.mubr.msk.f32.mxu1 %vm34_vm0, %v2954_v4  ;;  %s2918_s9 = smov 120   ;;  %vm2352_vm13 = vcmask 454016   ;;  %vm2371_vm14 = vcmask 519616   ;;  %vm2390_vm15 = vcmask 585216  }
   0x7   :  { %2675 = vmatmul.mubr.msk.f32.vlgmr.msra.gmra.mxu0 %vm34_vm0, %v2959_v5  ;;  %2685 = vmatmul.mubr.msk.f32.vlgmr.msra.gmra.mxu1 %vm34_vm0, %v2959_v5 }
   0x8   :  { %2690 = vmatprep.subr.mxu0 %v31_v6  ;;  %2700 = vmatprep.subr.mxu1 %v33_v7 }
   0x9   :  { %2691 = vmatpush3.msra.mxu0 %v31_v6  ;;  %2677 = vmatprep.mubr.msk.f32.mxu0 %vm34_vm0, %v2974_v8 }
   0xa   :  { %2687 = vmatprep.mubr.msk.f32.mxu1 %vm34_vm0, %v2974_v8  ;;  %2701 = vmatpush3.msra.mxu1 %v33_v7 }
   0xb   :  { %2678 = vmatmul.mubr.msk.f32.gmra.mxu0 %vm34_vm0, %v2983_v9  ;;  %2688 = vmatmul.mubr.msk.f32.gmra.mxu1 %vm34_vm0, %v2983_v9 }
   0xc   :  { %2692 = vmatprep.subr.mxu0 %v30_v10  ;;  %2702 = vmatprep.subr.mxu1 %v32_v11 }
   0xd   :  { %2693 = vmatpush3.msra.mxu0 %v30_v10  ;;  %2694 = vmatprep.mubr.msk.f32.mxu0 %vm34_vm0, %v2954_v4 }
   0xe   :  { %2703 = vmatpush3.msra.mxu1 %v32_v11  ;;  %2704 = vmatprep.mubr.msk.f32.mxu1 %vm34_vm0, %v2954_v4 }
   0xf   :  { %2695 = vmatmul.mubr.msk.f32.vlgmr.msra.gmra.mxu0 %vm34_vm0, %v2959_v5  ;;  %2705 = vmatmul.mubr.msk.f32.vlgmr.msra.gmra.mxu1 %vm34_vm0, %v2959_v5 }
  0x10   :  { %2697 = vmatprep.mubr.msk.f32.mxu0 %vm34_vm0, %v2974_v8  ;;  %2707 = vmatprep.mubr.msk.f32.mxu1 %vm34_vm0, %v2974_v8 }
  0x13   :  { %2698 = vmatmul.mubr.msk.f32.gmra.mxu0 %vm34_vm0, %v2983_v9  ;;  %2708 = vmatmul.mubr.msk.f32.gmra.mxu1 %vm34_vm0, %v2983_v9  ;;  %vm2409_vm0 = vcmask 650816  }
  0xc7   :  { %v3015_v12 = vpop.f32.mrf.mxu0  ;;  %v3017_v13 = vpop.f32.mrf.mxu1 }
  0xc8   :  { %v388_v14 = vmul.f32 %v3015_v12, %v3015_v12  ;;  %v392_v17 = vmul.f32 %v3017_v13, %v3017_v13  ;;  %v411_v20 = vsel %vm403_vm1, %v3015_v12, 0.0  ;;  %v412_v22 = vsel %vm403_vm1, %v3017_v13, 0.0 }
  0xc9   :  { %v3021_v15 = vpop.f32.mrf.mxu0  ;;  %v3023_v16 = vpop.f32.mrf.mxu1  ;;  %v413_v36 = vadd.f32 %v412_v22, %v411_v20 }
  0xca   :  { %v439_v21 = vsel %vm403_vm1, %v388_v14, 0.0  ;;  %v387_v23 = vmul.f32 %v3021_v15, %v3021_v15  ;;  %v391_v24 = vmul.f32 %v3023_v16, %v3023_v16  ;;  %v440_v27 = vsel %vm403_vm1, %v392_v17, 0.0 }
  0xcb   :  { %v3027_v18 = vpop.f32.mrf.mxu0  ;;  %v3029_v19 = vpop.f32.mrf.mxu1  ;;  %v404_v37 = vsel %vm403_vm1, %v3021_v15, 0.0  ;;  %v405_v41 = vsel %vm403_vm1, %v3023_v16, 0.0  ;;  %v441_v45 = vadd.f32 %v440_v27, %v439_v21 }
  0xcc   :  { %v390_v28 = vmul.f32 %v3027_v18, %v3027_v18  ;;  %v394_v29 = vmul.f32 %v3029_v19, %v3029_v19  ;;  %v425_v31 = vsel %vm403_vm1, %v3027_v18, 0.0  ;;  %v426_v32 = vsel %vm403_vm1, %v3029_v19, 0.0 }
  0xcd   :  { %v3040_v25 = vpop.f32.mrf.mxu0  ;;  %v3042_v26 = vpop.f32.mrf.mxu1  ;;  %v432_v40 = vsel %vm403_vm1, %v387_v23, 0.0  ;;  %v433_v42 = vsel %vm403_vm1, %v391_v24, 0.0  ;;  %v427_v47 = vadd.f32 %v426_v32, %v425_v31 }
  0xce   :  { %v389_v30 = vmul.f32 %v3040_v25, %v3040_v25  ;;  %v393_v33 = vmul.f32 %v3042_v26, %v3042_v26  ;;  %v418_v38 = vsel %vm403_vm1, %v3040_v25, 0.0  ;;  %v419_v39 = vsel %vm403_vm1, %v3042_v26, 0.0 }
  0xcf   :  { %v3057_v34 = vpop.f32.mrf.mxu0  ;;  %v3059_v35 = vpop.f32.mrf.mxu1  ;;  %v453_v46 = vsel %vm403_vm1, %v390_v28, 0.0  ;;  %v454_v48 = vsel %vm403_vm1, %v394_v29, 0.0  ;;  %v420_v50 = vadd.f32 %v419_v39, %v418_v38  ;;  %v406_v38 = vadd.f32 %v405_v41, %v404_v37 }
  0xd0   :  { %v446_v49 = vsel %vm403_vm1, %v389_v30, 0.0  ;;  %v447_v51 = vsel %vm403_vm1, %v393_v33, 0.0  ;;  %v396_v52 = vmul.f32 %v3057_v34, %v3057_v34  ;;  %v414_v53 = vsel %vm403_vm1, %v3057_v34, 0.0 }
  0xd1   :  { %v3071_v43 = vpop.f32.mrf.mxu0  ;;  %v3073_v44 = vpop.f32.mrf.mxu1  ;;  %v400_v60 = vmul.f32 %v3059_v35, %v3059_v35  ;;  %v455_v1 = vadd.f32 %v454_v48, %v453_v46  ;;  %v448_v7 = vadd.f32 %v447_v51, %v446_v49  ;;  %v415_v29 = vadd.f32 %v414_v53, %v413_v36 }
  0xd2   :  { %v395_v61 = vmul.f32 %v3071_v43, %v3071_v43  ;;  %v442_v23 = vsel %vm403_vm1, %v396_v52, 0.0  ;;  %v407_v30 = vsel %vm403_vm1, %v3071_v43, 0.0  ;;  %v416_v33 = vsel %vm403_vm1, %v3059_v35, 0.0 }
  0xd3   :  { %v3083_v54 = vpop.f32.mrf.mxu0  ;;  %v3085_v55 = vpop.f32.mrf.mxu1  ;;  %v444_v48 = vsel %vm403_vm1, %v400_v60, 0.0  ;;  %v408_v51 = vadd.f32 %v407_v30, %v406_v38  ;;  %v434_v52 = vadd.f32 %v433_v42, %v432_v40  ;;  %v399_v53 = vmul.f32 %v3073_v44, %v3073_v44 }
  0xd4   :  { %v398_v56 = vmul.f32 %v3083_v54, %v3083_v54  ;;  %v428_v57 = vsel %vm403_vm1, %v3083_v54, 0.0  ;;  %v402_v58 = vmul.f32 %v3085_v55, %v3085_v55  ;;  %v430_v59 = vsel %vm403_vm1, %v3085_v55, 0.0 }
  0xd5   :  { %v3099_v62 = vpop.f32.mrf.mxu0  ;;  %v3101_v63 = vpop.f32.mrf.mxu1  ;;  %v429_v0 = vadd.f32 %v428_v57, %v427_v47  ;;  %v443_v47 = vadd.f32 %v442_v23, %v441_v45  ;;  %v435_v36 = vsel %vm403_vm1, %v395_v61, 0.0  ;;  %v409_v45 = vsel %vm403_vm1, %v3073_v44, 0.0 }
  0xd6   :  { %v397_v2 = vmul.f32 %v3099_v62, %v3099_v62  ;;  %v421_v3 = vsel %vm403_vm1, %v3099_v62, 0.0  ;;  %v401_v6 = vmul.f32 %v3101_v63, %v3101_v63  ;;  %v456_v14 = vsel %vm403_vm1, %v398_v56, 0.0 }
  0xd7   :  { %v431_v10 = vadd.f32 %v430_v59, %v429_v0  ;;  %v422_v11 = vadd.f32 %v421_v3, %v420_v50  ;;  %v458_v17 = vsel %vm403_vm1, %v402_v58, 0.0  ;;  %v423_v20 = vsel %vm403_vm1, %v3101_v63, 0.0 }
  0xd8   :  { %v457_v21 = vadd.f32 %v456_v14, %v455_v1  ;;  %v449_v22 = vsel %vm403_vm1, %v397_v2, 0.0  ;;  %v451_v32 = vsel %vm403_vm1, %v401_v6, 0.0  ;;  %v417_v50 = vadd.f32 %v416_v33, %v415_v29  ;;  %v21_v1 = vld [vmem:[%s3642_s2 + $0x18] sm:$0xff]  ;;  %v20_v2 = vld [vmem:[%s3642_s2 + $0x10] sm:$0xff] }
  0xd9   :  { %v469_v24 = vsel %vm403_vm1, %v431_v10, 0.0  ;;  %v424_v27 = vadd.f32 %v423_v20, %v422_v11  ;;  %v450_v28 = vadd.f32 %v449_v22, %v448_v7  ;;  %v445_v41 = vadd.f32 %v444_v48, %v443_v47 }
  0xda   :  { %470 = vadd.xlane.f32.xlu0 %v469_v24  ;;  %v459_v31 = vadd.f32 %v458_v17, %v457_v21  ;;  %v436_v56 = vadd.f32 %v435_v36, %v434_v52  ;;  %v463_v57 = vsel %vm403_vm1, %v417_v50, 0.0  ;;  %v410_v58 = vadd.f32 %v409_v45, %v408_v51 }
  0xdb   :  { %v466_v39 = vsel %vm403_vm1, %v424_v27, 0.0  ;;  %v452_v46 = vadd.f32 %v451_v32, %v450_v28  ;;  %v437_v59 = vsel %vm403_vm1, %v399_v53, 0.0  ;;  %v475_v40 = vsel %vm403_vm1, %v445_v41, 0.0  ;;  %v19_v41 = vld [vmem:[%s3642_s2 + $0x8] sm:$0xff] }
  0xdc   :  { %467 = vadd.xlane.f32.xlu1 %v466_v39  ;;  %v481_v49 = vsel %vm403_vm1, %v459_v31, 0.0  ;;  %v438_v42 = vadd.f32 %v437_v59, %v436_v56  ;;  %v460_v60 = vsel %vm403_vm1, %v410_v58, 0.0  ;;  %v2897_v0 = vmov 1  }
  0xdd   :  { %v478_v37 = vsel %vm403_vm1, %v452_v46, 0.0  ;;  %2861 = vset.pattern.permute.xlu1 %v2897_v0  ;;  %v2898_v3 = vmov 0  }
  0xde   :  { %482 = vadd.xlane.f32.xlu0 %v481_v49  ;;  %v472_v61 = vsel %vm403_vm1, %v438_v42, 0.0  ;;  %v2899_v42 = vmov 0.0  }
  0xdf   :  { %2860 = vset.pattern.permute.xlu0 %v2898_v3  ;;  %2710 = vmatprep.subr.mxu0 %v2899_v42 }
  0xe0   :  { %479 = vadd.xlane.f32.xlu1 %v478_v37  ;;  %2721 = vmatprep.subr.mxu1 %v2899_v42 }
  0xe1   :  { %2718 = vmatprep.mubr.msk.f32.mxu0 %vm2901_vm2, %v2899_v42  ;;  %2729 = vmatprep.mubr.msk.f32.mxu1 %vm2901_vm2, %v2899_v42 }
  0xe2   :  { %464 = vadd.xlane.f32.xlu0 %v463_v57 }
  0xe4   :  { %476 = vadd.xlane.f32.xlu1 %v475_v40  ;;  %v18_v40 = vld [vmem:[%s3642_s2] sm:$0xff] }
  0xe6   :  { %461 = vadd.xlane.f32.xlu0 %v460_v60 }
  0xe8   :  { %473 = vadd.xlane.f32.xlu1 %v472_v61  ;;  %v22_v61 = vld [vmem:[%s3642_s2] sm:$0x1] }
  0xf9   :  { %581 = vperm.xlu1 %2861, %v21_v1  }
  0xfd   :  { %576 = vperm.xlu1 %2861, %v20_v2  }
 0x101   :  { %2862 = vset.pattern.permute.xlu1 %v2898_v3 }
 0x163   :  { %v471_v6 = vpop.xlane.xlu0 %470 }
 0x164   :  { %v3141_v7 = vmul.f32 0.03125, %v471_v6 }
 0x165   :  { %v468_v10 = vpop.xlane.xlu1 %467 }
 0x166   :  { %v3143_v14 = vmul.f32 0.03125, %v468_v10  ;;  %v495_v17 = vmul.f32 %v3141_v7, %v3141_v7 }
 0x167   :  { %v483_v11 = vpop.xlane.xlu0 %482 }
 0x168   :  { %v491_v20 = vmul.f32 0.03125, %v483_v11  ;;  %v494_v28 = vmul.f32 %v3143_v14, %v3143_v14 }
 0x169   :  { %v480_v21 = vpop.xlane.xlu1 %479 }
 0x16a   :  { %v499_v22 = vsub.f32 %v491_v20, %v495_v17  ;;  %v490_v23 = vmul.f32 0.03125, %v480_v21 }
 0x16b   :  { %v465_v24 = vpop.xlane.xlu0 %464 }
 0x16c   :  { %v519_v27 = vadd.f32 1e-05, %v499_v22  ;;  %v3149_v29 = vmul.f32 0.03125, %v465_v24  ;;  %v498_v31 = vsub.f32 %v490_v23, %v494_v28 }
 0x16d   :  { %v477_v30 = vpop.xlane.xlu1 %476 }
 0x16e   :  { %2871 = vrsqrt.f32 %v519_v27  ;;  %v493_v32 = vmul.f32 %v3149_v29, %v3149_v29  ;;  %v489_v33 = vmul.f32 0.03125, %v477_v30  ;;  %v518_v48 = vadd.f32 1e-05, %v498_v31 }
 0x16f   :  { %v462_v38 = vpop.xlane.xlu0 %461 }
 0x170   :  { %v497_v39 = vsub.f32 %v489_v33, %v493_v32  ;;  %v3153_v46 = vmul.f32 0.03125, %v462_v38  ;;  %v511_v32 = vsub.f32 %v3083_v54, %v3141_v7  ;;  %v501_v33 = vsub.f32 %v3015_v12, %v3149_v29 }
 0x171   :  { %v474_v47 = vpop.xlane.xlu1 %473 }
 0x172   :  { %v517_v36 = vadd.f32 1e-05, %v497_v39  ;;  %v492_v49 = vmul.f32 %v3153_v46, %v3153_v46  ;;  %v488_v50 = vmul.f32 0.03125, %v474_v47  ;;  %v515_v47 = vsub.f32 %v3085_v55, %v3141_v7 }
 0x174   :  { %2873 = vrsqrt.f32 %v517_v36  ;;  %v496_v51 = vsub.f32 %v488_v50, %v492_v49 }
 0x175   :  { %2875 = vrsqrt.f32 %v518_v48 }
 0x176   :  { %v516_v53 = vadd.f32 1e-05, %v496_v51 }
 0x178   :  { %2877 = vrsqrt.f32 %v516_v53 }
 0x17b   :  { %v2872_v52 = vpop.eup %2871 }
 0x17c   :  { %v527_v37 = vmul.f32 %v2872_v52, %v21_v1  ;;  %v582_v1 = vpop.permute.xlu1 %581 }
 0x17e   :  { %545 = vperm.xlu0 %2860, %v527_v37  }
 0x181   :  { %v2874_v56 = vpop.eup %2873 }
 0x182   :  { %v525_v45 = vmul.f32 %v2874_v56, %v19_v41  ;;  %v2876_v57 = vpop.eup %2875  ;;  %1056 = vrot.lane.b32.xlu0 %v22_v61, %s2902_s22 }
 0x183   :  { %v526_v58 = vmul.f32 %v2876_v57, %v20_v2  ;;  %v503_v2 = vsub.f32 %v3027_v18, %v3141_v7  ;;  %v502_v18 = vsub.f32 %v3040_v25, %v3143_v14  ;;  %v505_v25 = vsub.f32 %v3017_v13, %v3149_v29 }
 0x184   :  { %535 = vperm.xlu1 %2862, %v525_v45  }
 0x185   :  { %v2878_v59 = vpop.eup %2877 }
 0x186   :  { %v524_v60 = vmul.f32 %v2878_v59, %v18_v40  ;;  %1139 = vrot.lane.b32.xlu0 %v2983_v9, %s2903_s23  ;;  %v3191_v9 = vpop.permute.xlu1 %576  ;;  %v514_v59 = vsub.f32 %v3101_v63, %v3143_v14  ;;  %v500_v63 = vsub.f32 %v3021_v15, %v3153_v46 }
 0x188   :  { %540 = vperm.xlu1 %2862, %v526_v58   ;;  %v510_v58 = vsub.f32 %v3099_v62, %v3143_v14  ;;  %v509_v62 = vsub.f32 %v3057_v34, %v3149_v29 }
 0x18a   :  { %1135 = vrot.lane.b32.xlu0 %v2959_v5, %s2903_s23 }
 0x18c   :  { %2863 = vset.pattern.permute.xlu1 %v2897_v0 }
 0x18d   :  { %571 = vperm.xlu1 %2863, %v19_v41  }
 0x191   :  { %2864 = vset.pattern.permute.xlu1 %v2898_v3  ;;  %v507_v3 = vsub.f32 %v3029_v19, %v3141_v7  ;;  %v506_v19 = vsub.f32 %v3042_v26, %v3143_v14 }
 0x192   :  { %530 = vperm.xlu1 %2864, %v524_v60  }
 0x196   :  { %2865 = vset.pattern.permute.xlu1 %v2897_v0  ;;  %v2565_v0 = vld [vmem:[%s3642_s2 + $0x1] ss:$0 sm:$0xff] }
 0x197   :  { %566 = vperm.xlu1 %2865, %v18_v40  }
 0x19b   :  { %680 = vrot.lane.b32.xlu1 %v2954_v4, %s2900_s17 }
 0x19f   :  { %1073 = vrot.lane.b32.xlu1 %v2565_v0, %s2902_s22 }
 0x1a3   :  { %1137 = vrot.lane.b32.xlu1 %v2974_v8, %s2903_s23 }
 0x1a7   :  { %1133 = vrot.lane.b32.xlu1 %v2954_v4, %s2903_s23 }
 0x1ab   :  { %1445 = vrot.lane.b32.xlu1 %v2954_v4, %s2904_s26 }
 0x1f9   :  { %v546_v6 = vpop.permute.xlu0 %545 }
 0x1fa   :  { %v551_v10 = vmul.f32 %v546_v6, %v503_v2  ;;  %v555_v11 = vmul.f32 %v546_v6, %v507_v3  ;;  %v559_v26 = vmul.f32 %v546_v6, %v511_v32  ;;  %v563_v51 = vmul.f32 %v546_v6, %v515_v47 }
 0x1fc   :  { %v587_v17 = vadd.f32 %v582_v1, %v551_v10  ;;  %v591_v8 = vadd.f32 %v582_v1, %v555_v11  ;;  %v3215_v37 = vadd.f32 %v582_v1, %v559_v26  ;;  %v3217_v57 = vadd.f32 %v582_v1, %v563_v51 }
 0x1fd   :  { %v512_v26 = vsub.f32 %v3073_v44, %v3153_v46 }
 0x1fe   :  { %v603_v20 = vadd.f32 3.0, %v587_v17  ;;  %v607_v21 = vadd.f32 3.0, %v591_v8  ;;  %v611_v11 = vadd.f32 3.0, %v3215_v37 }
 0x1ff   :  { %v3193_v5 = vpop.permute.xlu1 %535 }
 0x200   :  { %v619_v22 = vmax.f32 %v603_v20, 0.0  ;;  %v623_v23 = vmax.f32 %v607_v21, 0.0  ;;  %v549_v49 = vmul.f32 %v3193_v5, %v501_v33  ;;  %v553_v12 = vmul.f32 %v3193_v5, %v505_v25 }
 0x201   :  { %v615_v20 = vadd.f32 3.0, %v3217_v57  ;;  %v627_v34 = vmax.f32 %v611_v11, 0.0  ;;  %v508_v25 = vsub.f32 %v3071_v43, %v3153_v46 }
 0x202   :  { %v635_v24 = vmin.f32 %v619_v22, 6.0  ;;  %v639_v27 = vmin.f32 %v623_v23, 6.0 }
 0x203   :  { %v541_v28 = vpop.permute.xlu1 %540  ;;  %v631_v15 = vmax.f32 %v615_v20, 0.0 }
 0x204   :  { %v651_v30 = vmul.f32 %v635_v24, %v587_v17  ;;  %v655_v31 = vmul.f32 %v639_v27, %v591_v8  ;;  %v550_v38 = vmul.f32 %v541_v28, %v502_v18  ;;  %v554_v39 = vmul.f32 %v541_v28, %v506_v19 }
 0x205   :  { %v558_v3 = vmul.f32 %v541_v28, %v510_v58  ;;  %v562_v6 = vmul.f32 %v541_v28, %v514_v59  ;;  %v504_v24 = vsub.f32 %v3023_v16, %v3153_v46  ;;  %v513_v27 = vsub.f32 %v3059_v35, %v3149_v29 }
 0x206   :  { %v667_v48 = vmul.f32 0.16666667, %v651_v30  ;;  %v671_v36 = vmul.f32 0.16666667, %v655_v31  ;;  %v586_v50 = vadd.f32 %v3191_v9, %v550_v38  ;;  %v590_v54 = vadd.f32 %v3191_v9, %v554_v39 }
 0x207   :  { %v594_v18 = vadd.f32 %v3191_v9, %v558_v3  ;;  %v598_v19 = vadd.f32 %v3191_v9, %v562_v6  ;;  %v557_v16 = vmul.f32 %v3193_v5, %v509_v62  ;;  %v561_v38 = vmul.f32 %v3193_v5, %v513_v27 }
 0x208   :  { %2711 = vmatpush3.xpose.msk.msra.mxu0 %vm403_vm1, %v667_v48  ;;  %2722 = vmatpush3.xpose.msk.msra.mxu1 %vm403_vm1, %v671_v36  ;;  %v572_v55 = vpop.permute.xlu1 %571  ;;  %v602_v7 = vadd.f32 3.0, %v586_v50  ;;  %v606_v52 = vadd.f32 3.0, %v590_v54  ;;  %v643_v5 = vmin.f32 %v627_v34, 6.0 }
 0x209   :  { %v585_v53 = vadd.f32 %v572_v55, %v549_v49  ;;  %2712 = vmatprep.subr.mxu0 %v2899_v42  ;;  %2723 = vmatprep.subr.mxu1 %v2899_v42  ;;  %v589_v13 = vadd.f32 %v572_v55, %v553_v12  ;;  %v610_v39 = vadd.f32 3.0, %v594_v18  ;;  %v614_v47 = vadd.f32 3.0, %v598_v19 }
 0x20a   :  { %v618_v41 = vmax.f32 %v602_v7, 0.0  ;;  %v622_v56 = vmax.f32 %v606_v52, 0.0  ;;  %v593_v48 = vadd.f32 %v572_v55, %v557_v16  ;;  %v597_v36 = vadd.f32 %v572_v55, %v561_v38 }
 0x20b   :  { %v601_v45 = vadd.f32 3.0, %v585_v53  ;;  %v605_v40 = vadd.f32 3.0, %v589_v13  ;;  %v626_v43 = vmax.f32 %v610_v39, 0.0  ;;  %v630_v52 = vmax.f32 %v614_v47, 0.0 }
 0x20c   :  { %v634_v60 = vmin.f32 %v618_v41, 6.0  ;;  %v638_v61 = vmin.f32 %v622_v56, 6.0  ;;  %v613_v44 = vadd.f32 3.0, %v597_v36 }
 0x20d   :  { %v617_v0 = vmax.f32 %v601_v45, 0.0  ;;  %v531_v2 = vpop.permute.xlu1 %530  ;;  %v621_v10 = vmax.f32 %v605_v40, 0.0  ;;  %v659_v45 = vmul.f32 %v643_v5, %v3215_v37 }
 0x20e   :  { %v650_v17 = vmul.f32 %v634_v60, %v586_v50  ;;  %v654_v8 = vmul.f32 %v638_v61, %v590_v54  ;;  %v548_v32 = vmul.f32 %v531_v2, %v500_v63  ;;  %v552_v33 = vmul.f32 %v531_v2, %v504_v24 }
 0x20f   :  { %v633_v1 = vmin.f32 %v617_v0, 6.0  ;;  %v637_v21 = vmin.f32 %v621_v10, 6.0  ;;  %v647_v54 = vmin.f32 %v631_v15, 6.0  ;;  %v556_v51 = vmul.f32 %v531_v2, %v508_v25 }
 0x210   :  { %v666_v14 = vmul.f32 0.16666667, %v650_v17  ;;  %v670_v22 = vmul.f32 0.16666667, %v654_v8  ;;  %v560_v12 = vmul.f32 %v531_v2, %v512_v26  ;;  %v642_v60 = vmin.f32 %v626_v43, 6.0 }
 0x211   :  { %v649_v23 = vmul.f32 %v633_v1, %v585_v53  ;;  %v653_v28 = vmul.f32 %v637_v21, %v589_v13  ;;  %v609_v53 = vadd.f32 3.0, %v593_v48  ;;  %v663_v58 = vmul.f32 %v647_v54, %v3217_v57 }
 0x212   :  { %v567_v30 = vpop.permute.xlu1 %566  ;;  %2713 = vmatpush3.xpose.msk.msra.mxu0 %vm403_vm1, %v666_v14  ;;  %2724 = vmatpush3.xpose.msk.msra.mxu1 %vm403_vm1, %v670_v22  ;;  %v646_v61 = vmin.f32 %v630_v52, 6.0  ;;  %v629_v2 = vmax.f32 %v613_v44, 0.0  ;;  %v675_v8 = vmul.f32 0.16666667, %v659_v45  ;;  %v658_v37 = vmul.f32 %v642_v60, %v594_v18 }
 0x213   :  { %v665_v31 = vmul.f32 0.16666667, %v649_v23  ;;  %v669_v35 = vmul.f32 0.16666667, %v653_v28  ;;  %2714 = vmatprep.subr.mxu0 %v2899_v42  ;;  %2725 = vmatprep.subr.mxu1 %v2899_v42  ;;  %v584_v29 = vadd.f32 %v567_v30, %v548_v32  ;;  %v588_v9 = vadd.f32 %v567_v30, %v552_v33  ;;  %v3283_v33 = vpop.permute.xlu0 %1056 }
 0x214   :  { %v592_v46 = vadd.f32 %v567_v30, %v556_v51  ;;  %v596_v13 = vadd.f32 %v567_v30, %v560_v12  ;;  %v625_v0 = vmax.f32 %v609_v53, 0.0  ;;  %v679_v1 = vmul.f32 0.16666667, %v663_v58 }
 0x215   :  { %v600_v49 = vadd.f32 3.0, %v584_v29  ;;  %v604_v50 = vadd.f32 3.0, %v588_v9  ;;  %v662_v20 = vmul.f32 %v646_v61, %v598_v19  ;;  %v645_v62 = vmin.f32 %v629_v2, 6.0 }
 0x216   :  { %2715 = vmatpush3.xpose.msk.msra.mxu0 %vm403_vm1, %v665_v31  ;;  %2726 = vmatpush3.xpose.msk.msra.mxu1 %vm403_vm1, %v669_v35  ;;  %v608_v3 = vadd.f32 3.0, %v592_v46  ;;  %v612_v6 = vadd.f32 3.0, %v596_v13  ;;  %v681_v17 = vpop.permute.xlu1 %680  ;;  %v641_v57 = vmin.f32 %v625_v0, 6.0  ;;  %v674_v14 = vmul.f32 0.16666667, %v658_v37 }
 0x217   :  { %2716 = vmatprep.subr.mxu0 %v2899_v42  ;;  %2727 = vmatprep.subr.mxu1 %v2899_v42  ;;  %v616_v55 = vmax.f32 %v600_v49, 0.0  ;;  %v620_v7 = vmax.f32 %v604_v50, 0.0  ;;  %v678_v22 = vmul.f32 0.16666667, %v662_v20  ;;  %v661_v24 = vmul.f32 %v645_v62, %v597_v36  ;;  %v3287_v16 = vpop.permute.xlu0 %1139 }
 0x218   :  { %v624_v21 = vmax.f32 %v608_v3, 0.0  ;;  %v628_v63 = vmax.f32 %v612_v6, 0.0  ;;  %v657_v23 = vmul.f32 %v641_v57, %v593_v48 }
 0x219   :  { %v632_v41 = vmin.f32 %v616_v55, 6.0  ;;  %v636_v56 = vmin.f32 %v620_v7, 6.0  ;;  %v677_v28 = vmul.f32 0.16666667, %v661_v24 }
 0x21a   :  { %v640_v27 = vmin.f32 %v624_v21, 6.0  ;;  %v644_v18 = vmin.f32 %v628_v63, 6.0  ;;  %v673_v19 = vmul.f32 0.16666667, %v657_v23  ;;  %v3285_v15 = vpop.permute.xlu1 %1073 }
 0x21b   :  { %v648_v59 = vmul.f32 %v632_v41, %v584_v29  ;;  %v652_v40 = vmul.f32 %v636_v56, %v588_v9  ;;  %v3297_v35 = vpop.permute.xlu0 %1135  ;;  %v24_v9 = vld [vmem:[%s3642_s2 + $0x2] sm:$0x1] }
 0x21c   :  { %v656_v30 = vmul.f32 %v640_v27, %v592_v46  ;;  %v660_v34 = vmul.f32 %v644_v18, %v596_v13  ;;  %1146 = vrot.lane.b32.xlu0 %v24_v9, %s2902_s22 }
 0x21d   :  { %v664_v10 = vmul.f32 0.16666667, %v648_v59  ;;  %v668_v11 = vmul.f32 0.16666667, %v652_v40 }
 0x21e   :  { %v672_v31 = vmul.f32 0.16666667, %v656_v30  ;;  %v676_v32 = vmul.f32 0.16666667, %v660_v34  ;;  %v3289_v38 = vpop.permute.xlu1 %1137 }
 0x21f   :  { %2717 = vmatpush3.xpose.msk.msra.mxu0 %vm403_vm1, %v664_v10  ;;  %2728 = vmatpush3.xpose.msk.msra.mxu1 %vm403_vm1, %v668_v11 }
 0x220   :  { %2732 = vmatprep.subr.mxu0 %v2899_v42  ;;  %2743 = vmatprep.subr.mxu1 %v2899_v42 }
 0x222   :  { %2719 = vmatmul.mubr.msk.f32.vlgmr.msra.gmra.mxu0 %vm403_vm1, %v681_v17  ;;  %2730 = vmatmul.mubr.msk.f32.vlgmr.msra.gmra.mxu1 %vm403_vm1, %v681_v17  ;;  %v3301_v29 = vpop.permute.xlu1 %1133 }
 0x223   :  { %2733 = vmatpush3.xpose.msk.msra.mxu0 %vm403_vm1, %v675_v8  ;;  %2744 = vmatpush3.xpose.msk.msra.mxu1 %vm403_vm1, %v679_v1 }
 0x224   :  { %2734 = vmatprep.subr.mxu0 %v2899_v42  ;;  %2745 = vmatprep.subr.mxu1 %v2899_v42 }
 0x225   :  { %2740 = vmatprep.mubr.msk.f32.mxu0 %vm2901_vm2, %v2899_v42  ;;  %2751 = vmatprep.mubr.msk.f32.mxu1 %vm2901_vm2, %v2899_v42 }
 0x227   :  { %2735 = vmatpush3.xpose.msk.msra.mxu0 %vm403_vm1, %v674_v14  ;;  %2746 = vmatpush3.xpose.msk.msra.mxu1 %vm403_vm1, %v678_v22  ;;  %v1060_v22 = vlaneseq }
 0x228   :  { %2736 = vmatprep.subr.mxu0 %v2899_v42  ;;  %2747 = vmatprep.subr.mxu1 %v2899_v42 }
 0x229   :  { %v1061_v23 = vshrl.u32 %v1060_v22, 7 }
 0x22b   :  { %2737 = vmatpush3.xpose.msk.msra.mxu0 %vm403_vm1, %v673_v19  ;;  %2748 = vmatpush3.xpose.msk.msra.mxu1 %vm403_vm1, %v677_v28  ;;  %v3327_v24 = vsub.s32 0, %v1061_v23 }
 0x22c   :  { %2738 = vmatprep.subr.mxu0 %v2899_v42  ;;  %2749 = vmatprep.subr.mxu1 %v2899_v42 }
 0x22f   :  { %2739 = vmatpush3.xpose.msk.msra.mxu0 %vm403_vm1, %v672_v31  ;;  %2750 = vmatpush3.xpose.msk.msra.mxu1 %vm403_vm1, %v676_v32 }
 0x230   :  { %2754 = vmatprep.subr.mxu0 %v2899_v42  ;;  %2765 = vmatprep.subr.mxu1 %v2899_v42 }
 0x232   :  { %2741 = vmatmul.mubr.msk.f32.vlgmr.msra.gmra.mxu0 %vm403_vm1, %v681_v17  ;;  %2752 = vmatmul.mubr.msk.f32.vlgmr.msra.gmra.mxu1 %vm403_vm1, %v681_v17 }
 0x233   :  { %2762 = vmatprep.mubr.msk.f32.mxu0 %vm2901_vm2, %v2899_v42  ;;  %2773 = vmatprep.mubr.msk.f32.mxu1 %vm2901_vm2, %v2899_v42 }
 0x234   :  { %2755 = vmatpush3.msra.mxu0 %v3287_v16  ;;  %2766 = vmatpush3.msra.mxu1 %v3287_v16 }
 0x235   :  { %2756 = vmatprep.subr.mxu0 %v2899_v42  ;;  %2767 = vmatprep.subr.mxu1 %v2899_v42 }
 0x236   :  { %2757 = vmatpush3.msra.mxu0 %v3289_v38  ;;  %2768 = vmatpush3.msra.mxu1 %v3289_v38 }
 0x237   :  { %2758 = vmatprep.subr.mxu0 %v2899_v42  ;;  %2769 = vmatprep.subr.mxu1 %v2899_v42 }
 0x238   :  { %2759 = vmatpush3.msra.mxu0 %v3297_v35  ;;  %2770 = vmatpush3.msra.mxu1 %v3297_v35 }
 0x239   :  { %2760 = vmatprep.subr.mxu0 %v2899_v42  ;;  %2771 = vmatprep.subr.mxu1 %v2899_v42 }
 0x23a   :  { %2761 = vmatpush3.msra.mxu0 %v3301_v29  ;;  %2772 = vmatpush3.msra.mxu1 %v3301_v29 }
 0x23b   :  { %2776 = vmatprep.subr.mxu0 %v2899_v42  ;;  %2787 = vmatprep.subr.mxu1 %v2899_v42 }
 0x2e2   :  { %v762_v39 = vpop.f32.mrf.mxu0  ;;  %v844_v47 = vpop.f32.mrf.mxu1 }
 0x2e3   :  { %v1012_v25 = vmul.f32 %v762_v39, %v762_v39  ;;  %v1013_v26 = vmul.f32 %v844_v47, %v844_v47  ;;  %v1017_v49 = vsel %vm1016_vm3, %v762_v39, 0.0  ;;  %v1018_v50 = vsel %vm1016_vm3, %v844_v47, 0.0 }
 0x2e4   :  { %v2720_v48 = vpop.f32.mrf.mxu0  ;;  %v2731_v36 = vpop.f32.mrf.mxu1  ;;  %v1019_v51 = vadd.f32 %v1018_v50, %v1017_v49 }
 0x2e5   :  { %v1024_v5 = vsel %vm1016_vm3, %v1012_v25, 0.0  ;;  %v1025_v54 = vsel %vm1016_vm3, %v1013_v26, 0.0 }
 0x2e6   :  { %v1026_v52 = vadd.f32 %v1025_v54, %v1024_v5 }
 0x2f2   :  { %v926_v12 = vpop.f32.mrf.mxu0  ;;  %v1008_v55 = vpop.f32.mrf.mxu1 }
 0x2f3   :  { %v1014_v7 = vmul.f32 %v926_v12, %v926_v12  ;;  %v1020_v4 = vsel %vm1016_vm3, %v926_v12, 0.0  ;;  %v1015_v43 = vmul.f32 %v1008_v55, %v1008_v55  ;;  %v1022_v41 = vsel %vm1016_vm3, %v1008_v55, 0.0 }
 0x2f4   :  { %v1021_v53 = vadd.f32 %v1020_v4, %v1019_v51  ;;  %v2742_v44 = vpop.f32.mrf.mxu0  ;;  %v2753_v46 = vpop.f32.mrf.mxu1 }
 0x2f5   :  { %v1027_v13 = vsel %vm1016_vm3, %v1014_v7, 0.0  ;;  %v1029_v58 = vsel %vm1016_vm3, %v1015_v43, 0.0 }
 0x2f6   :  { %v1028_v56 = vadd.f32 %v1027_v13, %v1026_v52  ;;  %v1023_v45 = vadd.f32 %v1022_v41, %v1021_v53 }
 0x2f8   :  { %v1030_v59 = vadd.f32 %v1029_v58, %v1028_v56  ;;  %v1031_v40 = vsel %vm1016_vm3, %v1023_v45, 0.0 }
 0x2f9   :  { %v1032_v60 = vrot.slane %v1031_v40, 4 }
 0x2fa   :  { %v1038_v61 = vsel %vm1016_vm3, %v1030_v59, 0.0 }
 0x2fb   :  { %v1033_v0 = vadd.f32 %v1032_v60, %v1031_v40  ;;  %v1039_v2 = vrot.slane %v1038_v61, 4 }
 0x2fd   :  { %v1034_v3 = vrot.slane %v1033_v0, 2  ;;  %v1040_v6 = vadd.f32 %v1039_v2, %v1038_v61 }
 0x2ff   :  { %v1035_v10 = vadd.f32 %v1034_v3, %v1033_v0  ;;  %v1041_v11 = vrot.slane %v1040_v6, 2 }
 0x301   :  { %v1036_v17 = vrot.slane %v1035_v10, 1  ;;  %v1042_v8 = vadd.f32 %v1041_v11, %v1040_v6 }
 0x303   :  { %v1037_v1 = vadd.f32 %v1036_v17, %v1035_v10  ;;  %v1043_v37 = vrot.slane %v1042_v8, 1 }
 0x305   :  { %v1044_v20 = vadd.f32 %v1043_v37, %v1042_v8  ;;  %v1045_v57 = vmul.f32 0.03125, %v1037_v1 }
 0x307   :  { %v1046_v62 = vmul.f32 0.03125, %v1044_v20  ;;  %v1047_v21 = vmul.f32 %v1045_v57, %v1045_v57  ;;  %v1052_v19 = vsub.f32 %v1008_v55, %v1045_v57  ;;  %v1049_v30 = vsub.f32 %v762_v39, %v1045_v57 }
 0x308   :  { %v1050_v34 = vsub.f32 %v844_v47, %v1045_v57  ;;  %v1051_v31 = vsub.f32 %v926_v12, %v1045_v57 }
 0x309   :  { %v1048_v63 = vsub.f32 %v1046_v62, %v1047_v21 }
 0x30b   :  { %v1053_v14 = vadd.f32 1e-05, %v1048_v63 }
 0x30d   :  { %2879 = vrsqrt.f32 %v1053_v14 }
 0x31a   :  { %v2880_v27 = vpop.eup %2879 }
 0x31b   :  { %v1059_v18 = vmul.f32 %v2880_v27, %v3283_v33 }
 0x31d   :  { %v1063_v28 = vrot.slane %v1059_v18, %v3327_v24 }
 0x31f   :  { %v1064_v32 = vmul.f32 %v1063_v28, %v1049_v30  ;;  %v1065_v9 = vmul.f32 %v1063_v28, %v1050_v34  ;;  %v1066_v48 = vmul.f32 %v1063_v28, %v1051_v31  ;;  %v1067_v36 = vmul.f32 %v1063_v28, %v1052_v19 }
 0x321   :  { %v1076_v25 = vadd.f32 %v3285_v15, %v1064_v32  ;;  %v1077_v26 = vadd.f32 %v3285_v15, %v1065_v9  ;;  %v1078_v49 = vadd.f32 %v3285_v15, %v1066_v48  ;;  %v1079_v50 = vadd.f32 %v3285_v15, %v1067_v36  ;;  %v2885_v32 = vld [vmem:[%s3641_s1] sm:$0xff]  ;;  %v2886_v9 = vld [vmem:[%s3641_s1 + $0x8] sm:$0xff]  ;;  %v1147_v48 = vpop.permute.xlu0 %1146 }
 0x322   :  { %1780 = vrot.lane.b32.xlu1 %v2885_v32, %s2905_s4 }
 0x323   :  { %v1080_v5 = vadd.f32 3.0, %v1076_v25  ;;  %v1081_v33 = vadd.f32 3.0, %v1077_v26  ;;  %v1082_v54 = vadd.f32 3.0, %v1078_v49  ;;  %v1083_v51 = vadd.f32 3.0, %v1079_v50 }
 0x325   :  { %v1084_v55 = vmax.f32 %v1080_v5, 0.0  ;;  %v1085_v39 = vmax.f32 %v1081_v33, 0.0  ;;  %v1086_v47 = vmax.f32 %v1082_v54, 0.0  ;;  %v1087_v12 = vmax.f32 %v1083_v51, 0.0 }
 0x327   :  { %v1088_v7 = vmin.f32 %v1084_v55, 6.0  ;;  %v1089_v4 = vmin.f32 %v1085_v39, 6.0  ;;  %v1090_v43 = vmin.f32 %v1086_v47, 6.0  ;;  %v1091_v52 = vmin.f32 %v1087_v12, 6.0 }
 0x329   :  { %v1092_v53 = vmul.f32 %v1088_v7, %v1076_v25  ;;  %v1093_v44 = vmul.f32 %v1089_v4, %v1077_v26  ;;  %v1094_v46 = vmul.f32 %v1090_v43, %v1078_v49  ;;  %v1095_v13 = vmul.f32 %v1091_v52, %v1079_v50 }
 0x32b   :  { %v3335_v41 = vmul.f32 0.16666667, %v1092_v53  ;;  %v3337_v56 = vmul.f32 0.16666667, %v1093_v44  ;;  %v3339_v15 = vmul.f32 0.16666667, %v1094_v46 }
 0x32c   :  { %v3341_v45 = vmul.f32 0.16666667, %v1095_v13 }
 0x32d   :  { %v1100_v58 = vsel %vm1016_vm3, %v3335_v41, 0.0  ;;  %v1107_v59 = vsel %vm1016_vm3, %v3337_v56, 0.0  ;;  %v1114_v40 = vsel %vm1016_vm3, %v3339_v15, 0.0 }
 0x32e   :  { %v1101_v60 = vrot.slane %v1100_v58, 4  ;;  %v1108_v61 = vrot.slane %v1107_v59, 4  ;;  %v1115_v0 = vrot.slane %v1114_v40, 4  ;;  %v1121_v2 = vsel %vm1016_vm3, %v3341_v45, 0.0 }
 0x32f   :  { %v1122_v3 = vrot.slane %v1121_v2, 4 }
 0x330   :  { %v1102_v6 = vadd.f32 %v1101_v60, %v1100_v58  ;;  %v1109_v10 = vadd.f32 %v1108_v61, %v1107_v59  ;;  %v1116_v11 = vadd.f32 %v1115_v0, %v1114_v40 }
 0x331   :  { %v1123_v17 = vadd.f32 %v1122_v3, %v1121_v2 }
 0x332   :  { %v1103_v8 = vrot.slane %v1102_v6, 2  ;;  %v1110_v1 = vrot.slane %v1109_v10, 2  ;;  %v1117_v37 = vrot.slane %v1116_v11, 2 }
 0x333   :  { %v1124_v20 = vrot.slane %v1123_v17, 2 }
 0x334   :  { %v1104_v57 = vadd.f32 %v1103_v8, %v1102_v6  ;;  %v1111_v62 = vadd.f32 %v1110_v1, %v1109_v10  ;;  %v1118_v14 = vadd.f32 %v1117_v37, %v1116_v11 }
 0x335   :  { %v1125_v22 = vadd.f32 %v1124_v20, %v1123_v17 }
 0x336   :  { %v1105_v21 = vrot.slane %v1104_v57, 1  ;;  %v1112_v63 = vrot.slane %v1111_v62, 1  ;;  %v1119_v28 = vrot.slane %v1118_v14, 1 }
 0x337   :  { %v1126_v30 = vrot.slane %v1125_v22, 1 }
 0x338   :  { %v1106_v23 = vadd.f32 %v1105_v21, %v1104_v57  ;;  %v1113_v27 = vadd.f32 %v1112_v63, %v1111_v62  ;;  %v1120_v34 = vadd.f32 %v1119_v28, %v1118_v14 }
 0x339   :  { %v1127_v31 = vadd.f32 %v1126_v30, %v1125_v22 }
 0x33a   :  { %v1129_v18 = vmul.f32 0.125, %v1106_v23  ;;  %v1130_v19 = vmul.f32 0.125, %v1113_v27 }
 0x33c   :  { %2763 = vmatmul.mubr.msk.f32.vlgmr.msra.gmra.mxu0 %vm1016_vm3, %v1129_v18  ;;  %2774 = vmatmul.mubr.msk.f32.vlgmr.msra.gmra.mxu1 %vm1016_vm3, %v1130_v19 }
 0x33d   :  { %2777 = vmatpush3.msra.mxu0 %v3287_v16  ;;  %2788 = vmatpush3.msra.mxu1 %v3287_v16  ;;  %v1131_v16 = vmul.f32 0.125, %v1120_v34 }
 0x33e   :  { %2778 = vmatprep.subr.mxu0 %v2899_v42  ;;  %2789 = vmatprep.subr.mxu1 %v2899_v42 }
 0x33f   :  { %2779 = vmatpush3.msra.mxu0 %v3289_v38  ;;  %2790 = vmatpush3.msra.mxu1 %v3289_v38  ;;  %v1132_v38 = vmul.f32 0.125, %v1127_v31 }
 0x340   :  { %2780 = vmatprep.subr.mxu0 %v2899_v42  ;;  %2791 = vmatprep.subr.mxu1 %v2899_v42 }
 0x341   :  { %2781 = vmatpush3.msra.mxu0 %v3297_v35  ;;  %2792 = vmatpush3.msra.mxu1 %v3297_v35  ;;  %v1446_v35 = vpop.permute.xlu1 %1445 }
 0x342   :  { %2782 = vmatprep.subr.mxu0 %v2899_v42  ;;  %2793 = vmatprep.subr.mxu1 %v2899_v42 }
 0x343   :  { %2783 = vmatpush3.msra.mxu0 %v3301_v29  ;;  %2784 = vmatprep.mubr.msk.f32.mxu0 %vm2901_vm2, %v2899_v42 }
 0x344   :  { %2794 = vmatpush3.msra.mxu1 %v3301_v29  ;;  %2795 = vmatprep.mubr.msk.f32.mxu1 %vm2901_vm2, %v2899_v42  ;;  %v25_v29 = vld [vmem:[%s3642_s2 + $0x3] sm:$0x1] }
 0x345   :  { %2785 = vmatmul.mubr.msk.f32.vlgmr.msra.gmra.mxu0 %vm1016_vm3, %v1131_v16  ;;  %2796 = vmatmul.mubr.msk.f32.vlgmr.msra.gmra.mxu1 %vm1016_vm3, %v1132_v38 }
 0x346   :  { %2798 = vmatprep.subr.mxu0 %v2899_v42  ;;  %2803 = vmatprep.subr.mxu1 %v2899_v42 }
 0x347   :  { %2800 = vmatprep.mubr.msk.f32.mxu0 %vm2901_vm2, %v2899_v42  ;;  %2805 = vmatprep.mubr.msk.f32.mxu1 %vm2901_vm2, %v2899_v42 }
 0x348   :  { %2799 = vmatpush3.msra.mxu0 %v1446_v35  ;;  %2804 = vmatpush3.msra.mxu1 %v1446_v35 }
 0x349   :  { %2808 = vmatprep.subr.mxu0 %v2899_v42  ;;  %2813 = vmatprep.subr.mxu1 %v2899_v42 }
 0x34a   :  { %1449 = vrot.lane.b32.xlu0 %v25_v29, %s2902_s22 }
 0x34e   :  { %1782 = vrot.lane.b32.xlu0 %v2886_v9, %s2905_s4 }
 0x394   :  { %v1781_v52 = vpop.permute.xlu1 %1780 }
 0x3bc   :  { %v1450_v53 = vpop.permute.xlu0 %1449 }
 0x3c0   :  { %v1783_v28 = vpop.permute.xlu0 %1782 }
 0x3fc   :  { %v1218_v36 = vpop.f32.mrf.mxu0  ;;  %v1291_v25 = vpop.f32.mrf.mxu1 }
 0x3fd   :  { %v1219_v26 = vadd.f32 %v1218_v36, %v1147_v48  ;;  %v1292_v49 = vadd.f32 %v1291_v25, %v1147_v48 }
 0x3fe   :  { %v2764_v50 = vpop.f32.mrf.mxu0  ;;  %v2775_v5 = vpop.f32.mrf.mxu1 }
 0x3ff   :  { %v1441_v33 = vmax.f32 %v1219_v26, 0.0  ;;  %v1442_v54 = vmax.f32 %v1292_v49, 0.0 }
 0x401   :  { %2801 = vmatmul.mubr.msk.f32.vlgmr.msra.gmra.mxu0 %vm403_vm1, %v1441_v33  ;;  %2806 = vmatmul.mubr.msk.f32.vlgmr.msra.gmra.mxu1 %vm403_vm1, %v1442_v54 }
 0x402   :  { %2809 = vmatpush3.msra.mxu0 %v1446_v35  ;;  %2814 = vmatpush3.msra.mxu1 %v1446_v35 }
 0x403   :  { %2810 = vmatprep.mubr.msk.f32.mxu0 %vm2901_vm2, %v2899_v42  ;;  %2815 = vmatprep.mubr.msk.f32.mxu1 %vm2901_vm2, %v2899_v42  ;;  %vm2447_vm2 = vcmask 782016  }
 0x405   :  { %v1364_v51 = vpop.f32.mrf.mxu0  ;;  %v1437_v55 = vpop.f32.mrf.mxu1 }
 0x406   :  { %v1365_v39 = vadd.f32 %v1364_v51, %v1147_v48  ;;  %v1438_v47 = vadd.f32 %v1437_v55, %v1147_v48 }
 0x407   :  { %v2786_v12 = vpop.f32.mrf.mxu0  ;;  %v2797_v7 = vpop.f32.mrf.mxu1 }
 0x408   :  { %v1443_v4 = vmax.f32 %v1365_v39, 0.0  ;;  %v1444_v43 = vmax.f32 %v1438_v47, 0.0 }
 0x40a   :  { %2811 = vmatmul.mubr.msk.f32.vlgmr.msra.gmra.mxu0 %vm403_vm1, %v1443_v4  ;;  %2816 = vmatmul.mubr.msk.f32.vlgmr.msra.gmra.mxu1 %vm403_vm1, %v1444_v43 }
 0x40b   :  { %2820 = vmatprep.mubr.msk.f32.mxu0 %vm1016_vm3, %v1781_v52  ;;  %2825 = vmatprep.mubr.msk.f32.mxu1 %vm1016_vm3, %v1781_v52 }
 0x4c1   :  { %v1521_v44 = vpop.f32.mrf.mxu0  ;;  %v1594_v42 = vpop.f32.mrf.mxu1 }
 0x4c2   :  { %v1522_v46 = vadd.f32 %v1521_v44, %v1450_v53  ;;  %v1595_v13 = vadd.f32 %v1594_v42, %v1450_v53 }
 0x4c3   :  { %v2802_v58 = vpop.f32.mrf.mxu0  ;;  %v2807_v59 = vpop.f32.mrf.mxu1 }
 0x4c4   :  { %v1744_v40 = vadd.f32 3.0, %v1522_v46  ;;  %v1745_v60 = vadd.f32 3.0, %v1595_v13 }
 0x4c6   :  { %v1748_v61 = vmax.f32 %v1744_v40, 0.0  ;;  %v1749_v0 = vmax.f32 %v1745_v60, 0.0 }
 0x4c8   :  { %v1752_v2 = vmin.f32 %v1748_v61, 6.0  ;;  %v1753_v3 = vmin.f32 %v1749_v0, 6.0 }
 0x4ca   :  { %v1756_v6 = vmul.f32 0.16666667, %v1752_v2  ;;  %v1757_v10 = vmul.f32 0.16666667, %v1753_v3  ;;  %v1667_v11 = vpop.f32.mrf.mxu0  ;;  %v1740_v17 = vpop.f32.mrf.mxu1 }
 0x4cb   :  { %v1668_v8 = vadd.f32 %v1667_v11, %v1450_v53  ;;  %v1741_v1 = vadd.f32 %v1740_v17, %v1450_v53 }
 0x4cc   :  { %v1763_v37 = vrot.slane %v1756_v6, %v3327_v24  ;;  %v1767_v20 = vrot.slane %v1757_v10, %v3327_v24  ;;  %v2812_v57 = vpop.f32.mrf.mxu0  ;;  %v2817_v62 = vpop.f32.mrf.mxu1 }
 0x4cd   :  { %v1746_v21 = vadd.f32 3.0, %v1668_v8  ;;  %v1747_v63 = vadd.f32 3.0, %v1741_v1  ;;  %v2906_v62 = vmov 2  }
 0x4ce   :  { %v1776_v14 = vmul.f32 %v1763_v37, %v3335_v41  ;;  %v1777_v22 = vmul.f32 %v1767_v20, %v3337_v56  ;;  %2866 = vset.pattern.permute.xlu0 %v2906_v62 }
 0x4cf   :  { %v1750_v23 = vmax.f32 %v1746_v21, 0.0  ;;  %v1751_v27 = vmax.f32 %v1747_v63, 0.0  ;;  %v2907_v21 = vmov 3   ;;  %v2887_v63 = vld [vmem:[%s3642_s2] sm:$0xff] }
 0x4d0   :  { %2818 = vmatprep.subr.msk.mxu0 %vm1016_vm3, %v1776_v14  ;;  %2823 = vmatprep.subr.msk.mxu1 %vm1016_vm3, %v1777_v22 }
 0x4d1   :  { %v1754_v18 = vmin.f32 %v1750_v23, 6.0  ;;  %v1755_v19 = vmin.f32 %v1751_v27, 6.0  ;;  %2819 = vmatpush3.xpose.msk.msra.mxu0 %vm1016_vm3, %v1776_v14  ;;  %2824 = vmatpush3.xpose.msk.msra.mxu1 %vm1016_vm3, %v1777_v22 }
 0x4d2   :  { %2867 = vset.pattern.permute.xlu1 %v2907_v21 }
 0x4d3   :  { %v1758_v30 = vmul.f32 0.16666667, %v1754_v18  ;;  %v1759_v34 = vmul.f32 0.16666667, %v1755_v19 }
 0x4d4   :  { %2821 = vmatmul.mubr.msk.f32.vlgmr.msra.gmra.mxu0 %vm1016_vm3, %v1783_v28  ;;  %2826 = vmatmul.mubr.msk.f32.vlgmr.msra.gmra.mxu1 %vm1016_vm3, %v1783_v28 }
 0x4d5   :  { %v1771_v41 = vrot.slane %v1758_v30, %v3327_v24  ;;  %v1775_v56 = vrot.slane %v1759_v34, %v3327_v24  ;;  %2830 = vmatprep.mubr.msk.f32.mxu0 %vm1016_vm3, %v1781_v52  ;;  %2835 = vmatprep.mubr.msk.f32.mxu1 %vm1016_vm3, %v1781_v52 }
 0x4d7   :  { %v1778_v31 = vmul.f32 %v1771_v41, %v3339_v15  ;;  %v1779_v16 = vmul.f32 %v1775_v56, %v3341_v45 }
 0x4d9   :  { %2828 = vmatprep.subr.msk.mxu0 %vm1016_vm3, %v1778_v31  ;;  %2833 = vmatprep.subr.msk.mxu1 %vm1016_vm3, %v1779_v16 }
 0x4da   :  { %2829 = vmatpush3.xpose.msk.msra.mxu0 %vm1016_vm3, %v1778_v31  ;;  %2834 = vmatpush3.xpose.msk.msra.mxu1 %vm1016_vm3, %v1779_v16 }
 0x4dd   :  { %2831 = vmatmul.mubr.msk.f32.vlgmr.msra.gmra.mxu0 %vm1016_vm3, %v1783_v28  ;;  %2836 = vmatmul.mubr.msk.f32.vlgmr.msra.gmra.mxu1 %vm1016_vm3, %v1783_v28  ;;  %vm2466_vm3 = vcmask 847616  }
 0x594   :  { %v3425_v24 = vpop.f32.mrf.mxu0  ;;  %v3427_v38 = vpop.f32.mrf.mxu1 }
 0x595   :  { %v2101_v45 = vmul.f32 %v3425_v24, %v3425_v24  ;;  %v2103_v29 = vmul.f32 %v3427_v38, %v3427_v38  ;;  %v2115_v49 = vsel %vm403_vm1, %v3425_v24, 0.0  ;;  %v2116_v33 = vsel %vm403_vm1, %v3427_v38, 0.0 }
 0x596   :  { %v3429_v35 = vpop.f32.mrf.mxu0  ;;  %v3431_v15 = vpop.f32.mrf.mxu1  ;;  %v2117_v42 = vadd.f32 %v2116_v33, %v2115_v49 }
 0x597   :  { %v2100_v32 = vmul.f32 %v3429_v35, %v3429_v35  ;;  %v2102_v9 = vmul.f32 %v3431_v15, %v3431_v15  ;;  %v2129_v48 = vsel %vm403_vm1, %v2101_v45, 0.0  ;;  %v2130_v36 = vsel %vm403_vm1, %v2103_v29, 0.0 }
 0x598   :  { %v2108_v25 = vsel %vm403_vm1, %v3429_v35, 0.0  ;;  %v2109_v26 = vsel %vm403_vm1, %v3431_v15, 0.0  ;;  %v2131_v4 = vadd.f32 %v2130_v36, %v2129_v48  ;;  %v2888_v48 = vld [vmem:[%s3642_s2 + $0x8] sm:$0xff] }
 0x599   :  { %v2122_v54 = vsel %vm403_vm1, %v2100_v32, 0.0  ;;  %v2123_v51 = vsel %vm403_vm1, %v2102_v9, 0.0  ;;  %v2110_v39 = vadd.f32 %v2109_v26, %v2108_v25 }
 0x59a   :  { %v2124_v13 = vadd.f32 %v2123_v51, %v2122_v54 }
 0x59d   :  { %v3449_v50 = vpop.f32.mrf.mxu0  ;;  %v3451_v5 = vpop.f32.mrf.mxu1 }
 0x59e   :  { %v2105_v55 = vmul.f32 %v3449_v50, %v3449_v50  ;;  %v2118_v47 = vsel %vm403_vm1, %v3449_v50, 0.0  ;;  %v2107_v43 = vmul.f32 %v3451_v5, %v3451_v5  ;;  %v2120_v8 = vsel %vm403_vm1, %v3451_v5, 0.0 }
 0x59f   :  { %v3461_v12 = vpop.f32.mrf.mxu0  ;;  %v3463_v7 = vpop.f32.mrf.mxu1  ;;  %v2119_v2 = vadd.f32 %v2118_v47, %v2117_v42 }
 0x5a0   :  { %v2104_v52 = vmul.f32 %v3461_v12, %v3461_v12  ;;  %v2111_v53 = vsel %vm403_vm1, %v3461_v12, 0.0  ;;  %v2106_v44 = vmul.f32 %v3463_v7, %v3463_v7  ;;  %v2132_v58 = vsel %vm403_vm1, %v2105_v55, 0.0 }
 0x5a1   :  { %v2112_v46 = vadd.f32 %v2111_v53, %v2110_v39  ;;  %v2113_v40 = vsel %vm403_vm1, %v3463_v7, 0.0  ;;  %v2133_v60 = vadd.f32 %v2132_v58, %v2131_v4  ;;  %v2134_v6 = vsel %vm403_vm1, %v2107_v43, 0.0 }
 0x5a2   :  { %v2125_v59 = vsel %vm403_vm1, %v2104_v52, 0.0  ;;  %v2127_v3 = vsel %vm403_vm1, %v2106_v44, 0.0  ;;  %v2121_v37 = vadd.f32 %v2120_v8, %v2119_v2 }
 0x5a3   :  { %v2114_v61 = vadd.f32 %v2113_v40, %v2112_v46  ;;  %v2126_v0 = vadd.f32 %v2125_v59, %v2124_v13  ;;  %v2135_v17 = vadd.f32 %v2134_v6, %v2133_v60  ;;  %v2892_v13 = vld [vmem:[%s3640_s0 + $0x30] sm:$0xff] }
 0x5a4   :  { %v2139_v57 = vsel %vm403_vm1, %v2121_v37, 0.0 }
 0x5a5   :  { %v2136_v10 = vsel %vm403_vm1, %v2114_v61, 0.0  ;;  %v2128_v11 = vadd.f32 %v2127_v3, %v2126_v0  ;;  %v2145_v20 = vsel %vm403_vm1, %v2135_v17, 0.0 }
 0x5a6   :  { %2137 = vadd.xlane.f32.xlu1 %v2136_v10 }
 0x5a7   :  { %v2142_v1 = vsel %vm403_vm1, %v2128_v11, 0.0 }
 0x5a8   :  { %2143 = vadd.xlane.f32.xlu0 %v2142_v1 }
 0x5aa   :  { %2146 = vadd.xlane.f32.xlu1 %v2145_v20  ;;  %v2893_v20 = vld [vmem:[%s3640_s0 + $0x8] sm:$0xff] }
 0x5ac   :  { %2140 = vadd.xlane.f32.xlu0 %v2139_v57 }
 0x5bb   :  { %2189 = vperm.xlu1 %2867, %v2887_v63  }
 0x5bf   :  { %2868 = vset.pattern.permute.xlu1 %v2906_v62  ;;  %v2896_v62 = vld [vmem:[%s3640_s0 + $0x38] sm:$0xff] }
 0x62f   :  { %v2138_v14 = vpop.xlane.xlu1 %2137 }
 0x630   :  { %v2148_v22 = vmul.f32 0.03125, %v2138_v14 }
 0x631   :  { %v2144_v23 = vpop.xlane.xlu0 %2143 }
 0x632   :  { %v2152_v27 = vmul.f32 %v2148_v22, %v2148_v22  ;;  %v2150_v18 = vmul.f32 0.03125, %v2144_v23  ;;  %v2156_v25 = vsub.f32 %v3429_v35, %v2148_v22  ;;  %v2158_v26 = vsub.f32 %v3431_v15, %v2148_v22  ;;  %v2889_v35 = vld [vmem:[%s3640_s0] sm:$0xff]  ;;  %v2890_v15 = vld [vmem:[%s3640_s0 + $0x10] sm:$0xff] }
 0x633   :  { %v2147_v28 = vpop.xlane.xlu1 %2146  ;;  %v2160_v49 = vsub.f32 %v3461_v12, %v2148_v22  ;;  %v2162_v33 = vsub.f32 %v3463_v7, %v2148_v22  ;;  %v2891_v7 = vld [vmem:[%s3640_s0 + $0x20] sm:$0xff] }
 0x634   :  { %v2154_v19 = vsub.f32 %v2150_v18, %v2152_v27  ;;  %v2151_v56 = vmul.f32 0.03125, %v2147_v28 }
 0x635   :  { %v2141_v30 = vpop.xlane.xlu0 %2140 }
 0x636   :  { %v2164_v34 = vadd.f32 1e-05, %v2154_v19  ;;  %v2149_v41 = vmul.f32 0.03125, %v2141_v30 }
 0x637   :  { %v2190_v51 = vpop.permute.xlu1 %2189 }
 0x638   :  { %2881 = vrsqrt.f32 %v2164_v34  ;;  %v2153_v31 = vmul.f32 %v2149_v41, %v2149_v41  ;;  %v2157_v40 = vsub.f32 %v3425_v24, %v2149_v41  ;;  %v2159_v60 = vsub.f32 %v3427_v38, %v2149_v41  ;;  %v2894_v38 = vld [vmem:[%s3640_s0 + $0x18] sm:$0xff] }
 0x639   :  { %v2161_v61 = vsub.f32 %v3449_v50, %v2149_v41  ;;  %v2163_v0 = vsub.f32 %v3451_v5, %v2149_v41  ;;  %v2895_v5 = vld [vmem:[%s3640_s0 + $0x28] sm:$0xff]  ;;  %s2908_s0 = smov 72  }
 0x63a   :  { %v2155_v16 = vsub.f32 %v2151_v56, %v2153_v31 }
 0x63c   :  { %v2165_v45 = vadd.f32 1e-05, %v2155_v16 }
 0x63e   :  { %2883 = vrsqrt.f32 %v2165_v45 }
 0x645   :  { %v2882_v29 = vpop.eup %2881 }
 0x646   :  { %v2168_v32 = vmul.f32 %v2887_v63, %v2882_v29 }
 0x648   :  { %2172 = vperm.xlu0 %2866, %v2168_v32  }
 0x64b   :  { %v2884_v9 = vpop.eup %2883 }
 0x64c   :  { %v2169_v36 = vmul.f32 %v2888_v48, %v2884_v9  ;;  %2870 = vset.pattern.permute.xlu0 %v2907_v21 }
 0x64e   :  { %2177 = vperm.xlu1 %2868, %v2169_v36  }
 0x652   :  { %2869 = vset.pattern.permute.xlu1 %v2907_v21 }
 0x653   :  { %2193 = vperm.xlu1 %2869, %v2888_v48  }
 0x6c3   :  { %v2173_v54 = vpop.permute.xlu0 %2172 }
 0x6c4   :  { %v2180_v55 = vmul.f32 %v2173_v54, %v2156_v25  ;;  %v2182_v39 = vmul.f32 %v2173_v54, %v2158_v26  ;;  %v2184_v47 = vmul.f32 %v2173_v54, %v2160_v49  ;;  %v2186_v4 = vmul.f32 %v2173_v54, %v2162_v33 }
 0x6c6   :  { %v2196_v43 = vadd.f32 %v2190_v51, %v2180_v55  ;;  %v2198_v52 = vadd.f32 %v2190_v51, %v2182_v39  ;;  %v2200_v53 = vadd.f32 %v2190_v51, %v2184_v47  ;;  %v2202_v44 = vadd.f32 %v2190_v51, %v2186_v4 }
 0x6c8   :  { %v2204_v42 = vadd.f32 %v2889_v35, %v2196_v43  ;;  %v2206_v12 = vadd.f32 %v2890_v15, %v2198_v52  ;;  %v2208_v46 = vadd.f32 %v2891_v7, %v2200_v53  ;;  %v2210_v58 = vadd.f32 %v2892_v13, %v2202_v44 }
 0x6c9   :  { %v2178_v59 = vpop.permute.xlu1 %2177 }
 0x6ca   :  { %2212 = vst.msk [vmem:[#allocation2] sm:$0xff] %vm403_vm1, %v2204_v42  ;;  %2214 = vst.msk [vmem:[#allocation2 + $0x10] sm:$0xff] %vm403_vm1, %v2206_v12  ;;  %v2181_v2 = vmul.f32 %v2178_v59, %v2157_v40  ;;  %v2183_v3 = vmul.f32 %v2178_v59, %v2159_v60  ;;  %v2185_v6 = vmul.f32 %v2178_v59, %v2161_v61 }
 0x6cb   :  { %2216 = vst.msk [vmem:[#allocation2 + $0x20] sm:$0xff] %vm403_vm1, %v2208_v46  ;;  %2218 = vst.msk [vmem:[#allocation2 + $0x30] sm:$0xff] %vm403_vm1, %v2210_v58  ;;  %v2187_v10 = vmul.f32 %v2178_v59, %v2163_v0 }
 0x6ce   :  { %v2194_v11 = vpop.permute.xlu1 %2193 }
 0x6cf   :  { %v2197_v17 = vadd.f32 %v2194_v11, %v2181_v2  ;;  %v2199_v8 = vadd.f32 %v2194_v11, %v2183_v3  ;;  %v2201_v1 = vadd.f32 %v2194_v11, %v2185_v6  ;;  %v2203_v37 = vadd.f32 %v2194_v11, %v2187_v10 }
 0x6d1   :  { %v2205_v24 = vadd.f32 %v2893_v20, %v2197_v17  ;;  %v2207_v50 = vadd.f32 %v2894_v38, %v2199_v8  ;;  %v2209_v57 = vadd.f32 %v2895_v5, %v2201_v1  ;;  %v2211_v21 = vadd.f32 %v2896_v62, %v2203_v37  ;;  %v2336_v63 = vld [vmem:[#allocation2 + $0x16] sm:$0x1]  ;;  %v2241_v22 = vld [vmem:[#allocation2 + $0x11] sm:$0x1]  ;;  %v2260_v16 = vld [vmem:[#allocation2 + $0x12] sm:$0x1] }
 0x6d2   :  { %v3531_v14 = vld [vmem:[#allocation2 + $0x26] sm:$0x1]  ;;  %v2343_v23 = vrot.slane %v2336_v63, 7  ;;  %v3533_v27 = vld [vmem:[#allocation2 + $0x21] sm:$0x1]  ;;  %v2248_v30 = vrot.slane %v2241_v22, 7 }
 0x6d3   :  { %2213 = vst.msk [vmem:[#allocation2 + $0x8] sm:$0xff] %vm403_vm1, %v2205_v24  ;;  %2215 = vst.msk [vmem:[#allocation2 + $0x18] sm:$0xff] %vm403_vm1, %v2207_v50  ;;  %v2345_v28 = vrot.slane %v3531_v14, 6  ;;  %v2240_v49 = vld [vmem:[#allocation2 + $0x1] sm:$0x1]  ;;  %v2250_v39 = vrot.slane %v3533_v27, 6 }
 0x6d4   :  { %2217 = vst.msk [vmem:[#allocation2 + $0x28] sm:$0xff] %vm403_vm1, %v2209_v57  ;;  %2219 = vst.msk [vmem:[#allocation2 + $0x38] sm:$0xff] %vm403_vm1, %v2211_v21  ;;  %v2335_v35 = vld [vmem:[#allocation2 + $0x6] sm:$0x1]  ;;  %v2243_v46 = vld [vmem:[#allocation2 + $0x31] sm:$0x1]  ;;  %v2249_v13 = vsel %vm2229_vm4, %v2248_v30, %v2240_v49 }
 0x6d5   :  { %v2267_v58 = vrot.slane %v2260_v16, 7  ;;  %v2261_v2 = vld [vmem:[#allocation2 + $0x22] sm:$0x1]  ;;  %v2338_v10 = vld [vmem:[#allocation2 + $0x36] sm:$0x1]  ;;  %v2344_v11 = vsel %vm2229_vm4, %v2343_v23, %v2335_v35  ;;  %v2251_v57 = vsel %vm2232_vm5, %v2250_v39, %v2249_v13  ;;  %v2252_v23 = vrot.slane %v2243_v46, 5 }
 0x6d6   :  { %v2279_v8 = vld [vmem:[#allocation2 + $0x13] sm:$0x1]  ;;  %v2259_v50 = vld [vmem:[#allocation2 + $0x2] sm:$0x1]  ;;  %v2262_v62 = vld [vmem:[#allocation2 + $0x32] sm:$0x1] }
 0x6d7   :  { %v2269_v21 = vrot.slane %v2261_v2, 6  ;;  %v2268_v27 = vsel %vm2229_vm4, %v2267_v58, %v2259_v50  ;;  %v2298_v30 = vld [vmem:[#allocation2 + $0x14] sm:$0x1]  ;;  %v2271_v49 = vrot.slane %v2262_v62, 5  ;;  %v2319_v62 = vld [vmem:[#allocation2 + $0x35] sm:$0x1] }
 0x6d8   :  { %v2305_v14 = vrot.slane %v2298_v30, 7  ;;  %v2300_v58 = vld [vmem:[#allocation2 + $0x34] sm:$0x1]  ;;  %v2328_v30 = vrot.slane %v2319_v62, 5  ;;  %vm2428_vm1 = vcmask 716416  }
 0x6da   :  { %v2393_v18 = vld [vmem:[#allocation2 + $0x19] sm:$0x1]  ;;  %v2392_v34 = vld [vmem:[#allocation2 + $0x9] sm:$0x1]  ;;  %v2373_v45 = vld [vmem:[#allocation2 + $0x8] sm:$0x1] }
 0x6db   :  { %v2394_v19 = vld [vmem:[#allocation2 + $0x29] sm:$0x1]  ;;  %v2395_v41 = vld [vmem:[#allocation2 + $0x39] sm:$0x1]  ;;  %v2400_v56 = vrot.slane %v2393_v18, 7 }
 0x6dc   :  { %v2402_v31 = vrot.slane %v2394_v19, 6  ;;  %v2374_v29 = vld [vmem:[#allocation2 + $0x18] sm:$0x1]  ;;  %v2375_v32 = vld [vmem:[#allocation2 + $0x28] sm:$0x1]  ;;  %v2404_v48 = vrot.slane %v2395_v41, 5 }
 0x6dd   :  { %v2401_v9 = vsel %vm2229_vm4, %v2400_v56, %v2392_v34  ;;  %v2376_v36 = vld [vmem:[#allocation2 + $0x38] sm:$0x1]  ;;  %v2381_v25 = vrot.slane %v2374_v29, 7  ;;  %v2383_v26 = vrot.slane %v2375_v32, 6  ;;  %v2431_v51 = vld [vmem:[#allocation2 + $0x1b] sm:$0x1]  ;;  %v2346_v34 = vsel %vm2232_vm5, %v2345_v28, %v2344_v11 }
 0x6de   :  { %v2403_v33 = vsel %vm2232_vm5, %v2402_v31, %v2401_v9  ;;  %v2385_v54 = vrot.slane %v2376_v36, 5  ;;  %v2432_v55 = vld [vmem:[#allocation2 + $0x2b] sm:$0x1]  ;;  %v2433_v52 = vld [vmem:[#allocation2 + $0x3b] sm:$0x1]  ;;  %v2438_v53 = vrot.slane %v2431_v51, 7  ;;  %v2253_v29 = vsel %vm2235_vm6, %v2252_v23, %v2251_v57 }
 0x6df   :  { %v2405_v47 = vsel %vm2235_vm6, %v2404_v48, %v2403_v33  ;;  %v2382_v4 = vsel %vm2229_vm4, %v2381_v25, %v2373_v45  ;;  %v2430_v43 = vld [vmem:[#allocation2 + $0xb] sm:$0x1]  ;;  %v2440_v44 = vrot.slane %v2432_v55, 6  ;;  %v2442_v15 = vrot.slane %v2433_v52, 5  ;;  %v2412_v12 = vld [vmem:[#allocation2 + $0x1a] sm:$0x1] }
 0x6e0   :  { %2406 = vrot.lane.b32.xlu1 %v2405_v47, %s2908_s0  ;;  %v2384_v42 = vsel %vm2232_vm5, %v2383_v26, %v2382_v4  ;;  %v2413_v7 = vld [vmem:[#allocation2 + $0x2a] sm:$0x1]  ;;  %v2439_v40 = vsel %vm2229_vm4, %v2438_v53, %v2430_v43  ;;  %v2414_v60 = vld [vmem:[#allocation2 + $0x3a] sm:$0x1]  ;;  %v2419_v61 = vrot.slane %v2412_v12, 7  ;;  %v2286_v19 = vrot.slane %v2279_v8, 7 }
 0x6e1   :  { %v2386_v59 = vsel %vm2235_vm6, %v2385_v54, %v2384_v42  ;;  %v2421_v0 = vrot.slane %v2413_v7, 6  ;;  %v2441_v3 = vsel %vm2232_vm5, %v2440_v44, %v2439_v40  ;;  %v2411_v6 = vld [vmem:[#allocation2 + $0xa] sm:$0x1]  ;;  %v2450_v17 = vld [vmem:[#allocation2 + $0x1c] sm:$0x1]  ;;  %v2423_v20 = vrot.slane %v2414_v60, 5 }
 0x6e2   :  { %2387 = vrot.lane.b32.xlu0 %v2386_v59, %s2905_s4  ;;  %v2443_v1 = vsel %vm2235_vm6, %v2442_v15, %v2441_v3  ;;  %v2420_v37 = vsel %vm2229_vm4, %v2419_v61, %v2411_v6  ;;  %v2451_v24 = vld [vmem:[#allocation2 + $0x2c] sm:$0x1]  ;;  %v2457_v38 = vrot.slane %v2450_v17, 7  ;;  %v2488_v63 = vld [vmem:[#allocation2 + $0x1e] sm:$0x1]  ;;  %v2347_v45 = vrot.slane %v2338_v10, 5 }
 0x6e3   :  { %v2422_v5 = vsel %vm2232_vm5, %v2421_v0, %v2420_v37  ;;  %v2280_v18 = vld [vmem:[#allocation2 + $0x23] sm:$0x1]  ;;  %v2449_v41 = vld [vmem:[#allocation2 + $0xc] sm:$0x1]  ;;  %v2459_v56 = vrot.slane %v2451_v24, 6  ;;  %v2495_v16 = vrot.slane %v2488_v63, 7  ;;  %v2270_v36 = vsel %vm2232_vm5, %v2269_v21, %v2268_v27 }
 0x6e4   :  { %2444 = vrot.lane.b32.xlu1 %v2443_v1, %s2909_s28  ;;  %v2424_v22 = vsel %vm2235_vm6, %v2423_v20, %v2422_v5  ;;  %v2489_v31 = vld [vmem:[#allocation2 + $0x2e] sm:$0x1]  ;;  %v2458_v32 = vsel %vm2229_vm4, %v2457_v38, %v2449_v41  ;;  %v2278_v9 = vld [vmem:[#allocation2 + $0x3] sm:$0x1]  ;;  %v2452_v48 = vld [vmem:[#allocation2 + $0x3c] sm:$0x1]  ;;  %v2348_v28 = vsel %vm2235_vm6, %v2347_v45, %v2346_v34  ;;  %v2272_v53 = vsel %vm2235_vm6, %v2271_v49, %v2270_v36 }
 0x6e5   :  { %v2281_v25 = vld [vmem:[#allocation2 + $0x33] sm:$0x1]  ;;  %v2288_v26 = vrot.slane %v2280_v18, 6  ;;  %v2487_v33 = vld [vmem:[#allocation2 + $0xe] sm:$0x1]  ;;  %v2497_v54 = vrot.slane %v2489_v31, 6  ;;  %v2287_v51 = vsel %vm2229_vm4, %v2286_v19, %v2278_v9  ;;  %v2460_v39 = vsel %vm2232_vm5, %v2459_v56, %v2458_v32 }
 0x6e6   :  { %2425 = vrot.lane.b32.xlu0 %v2424_v22, %s2910_s29  ;;  %v2299_v55 = vld [vmem:[#allocation2 + $0x24] sm:$0x1]  ;;  %s2912_s4 = smov 48   ;;  %v2490_v47 = vld [vmem:[#allocation2 + $0x3e] sm:$0x1]  ;;  %v2496_v4 = vsel %vm2229_vm4, %v2495_v16, %v2487_v33  ;;  %v2461_v52 = vrot.slane %v2452_v48, 5 }
 0x6e7   :  { %v2317_v43 = vld [vmem:[#allocation2 + $0x15] sm:$0x1]  ;;  %v2297_v44 = vld [vmem:[#allocation2 + $0x4] sm:$0x1]  ;;  %v2289_v35 = vsel %vm2232_vm5, %v2288_v26, %v2287_v51  ;;  %v2290_v42 = vrot.slane %v2281_v25, 5  ;;  %v2307_v12 = vrot.slane %v2299_v55, 6  ;;  %v2498_v46 = vsel %vm2232_vm5, %v2497_v54, %v2496_v4 }
 0x6e8   :  { %2254 = vrot.lane.b32.xlu1 %v2253_v29, %s2911_s30  ;;  %v2306_v15 = vsel %vm2229_vm4, %v2305_v14, %v2297_v44  ;;  %v2462_v7 = vsel %vm2235_vm6, %v2461_v52, %v2460_v39  ;;  %v2499_v13 = vrot.slane %v2490_v47, 5  ;;  %v2318_v59 = vld [vmem:[#allocation2 + $0x25] sm:$0x1]  ;;  %v2324_v40 = vrot.slane %v2317_v43, 7  ;;  %v2355_v60 = vld [vmem:[#allocation2 + $0x17] sm:$0x1] }
 0x6e9   :  { %v2221_v61 = vld [vmem:[#allocation2 + $0x10] sm:$0x1]  ;;  %v2222_v0 = vld [vmem:[#allocation2 + $0x20] sm:$0x1]  ;;  %v2291_v2 = vsel %vm2235_vm6, %v2290_v42, %v2289_v35  ;;  %v2308_v17 = vsel %vm2232_vm5, %v2307_v12, %v2306_v15  ;;  %v2309_v8 = vrot.slane %v2300_v58, 5  ;;  %v2326_v37 = vrot.slane %v2318_v59, 6 }
 0x6ea   :  { %2349 = vrot.lane.b32.xlu0 %v2348_v28, %s2912_s4  ;;  %v2223_v3 = vld [vmem:[#allocation2 + $0x30] sm:$0x1]  ;;  %v2228_v6 = vrot.slane %v2221_v61, 7  ;;  %v2231_v10 = vrot.slane %v2222_v0, 6  ;;  %v2500_v11 = vsel %vm2235_vm6, %v2499_v13, %v2498_v46  ;;  %v2316_v1 = vld [vmem:[#allocation2 + $0x5] sm:$0x1] }
 0x6eb   :  { %v2220_v20 = vld [vmem:[#allocation2] sm:$0x1]  ;;  %v2325_v24 = vsel %vm2229_vm4, %v2324_v40, %v2316_v1  ;;  %v2356_v38 = vld [vmem:[#allocation2 + $0x27] sm:$0x1]  ;;  %v2362_v50 = vrot.slane %v2355_v60, 7  ;;  %v2234_v5 = vrot.slane %v2223_v3, 5  ;;  %v2310_v22 = vsel %vm2235_vm6, %v2309_v8, %v2308_v17 }
 0x6ec   :  { %2273 = vrot.lane.b32.xlu1 %v2272_v53, %s2913_s5  ;;  %v2230_v57 = vsel %vm2229_vm4, %v2228_v6, %v2220_v20  ;;  %v2469_v21 = vld [vmem:[#allocation2 + $0x1d] sm:$0x1]  ;;  %v2327_v27 = vsel %vm2232_vm5, %v2326_v37, %v2325_v24  ;;  %v2354_v18 = vld [vmem:[#allocation2 + $0x7] sm:$0x1]  ;;  %v2364_v19 = vrot.slane %v2356_v38, 6 }
 0x6ed   :  { %v2233_v63 = vsel %vm2232_vm5, %v2231_v10, %v2230_v57  ;;  %v2363_v34 = vsel %vm2229_vm4, %v2362_v50, %v2354_v18  ;;  %v2470_v41 = vld [vmem:[#allocation2 + $0x2d] sm:$0x1]  ;;  %v2476_v56 = vrot.slane %v2469_v21, 7  ;;  %v2357_v31 = vld [vmem:[#allocation2 + $0x37] sm:$0x1]  ;;  %v2329_v45 = vsel %vm2235_vm6, %v2328_v30, %v2327_v27 }
 0x6ee   :  { %2463 = vrot.lane.b32.xlu0 %v2462_v7, %s2904_s26  ;;  %v2236_v23 = vsel %vm2235_vm6, %v2234_v5, %v2233_v63  ;;  %s2915_s26 = smov 32   ;;  %v2507_v16 = vld [vmem:[#allocation2 + $0x1f] sm:$0x1]  ;;  %v2365_v29 = vsel %vm2232_vm5, %v2364_v19, %v2363_v34  ;;  %v2468_v32 = vld [vmem:[#allocation2 + $0xd] sm:$0x1]  ;;  %v2478_v9 = vrot.slane %v2470_v41, 6 }
 0x6ef   :  { %2239 = vst.msk [vmem:[%s3643_s3] sm:$0xf] %vm2238_vm7, %v2236_v23  ;;  %v2366_v48 = vrot.slane %v2357_v31, 5  ;;  %v2477_v36 = vsel %vm2229_vm4, %v2476_v56, %v2468_v32  ;;  %v2508_v25 = vld [vmem:[#allocation2 + $0x2f] sm:$0x1]  ;;  %v2514_v26 = vrot.slane %v2507_v16, 7 }
 0x6f0   :  { %2292 = vrot.lane.b32.xlu1 %v2291_v2, %s2914_s6  ;;  %v2471_v14 = vld [vmem:[#allocation2 + $0x3d] sm:$0x1]  ;;  %v2479_v49 = vsel %vm2232_vm5, %v2478_v9, %v2477_v36  ;;  %v2506_v33 = vld [vmem:[#allocation2 + $0xf] sm:$0x1]  ;;  %v2516_v54 = vrot.slane %v2508_v25, 6 }
 0x6f1   :  { %v2367_v28 = vsel %vm2235_vm6, %v2366_v48, %v2365_v29  ;;  %v2480_v51 = vrot.slane %v2471_v14, 5  ;;  %v2515_v55 = vsel %vm2229_vm4, %v2514_v26, %v2506_v33  ;;  %v2509_v39 = vld [vmem:[#allocation2 + $0x3f] sm:$0x1]  ;;  %vm2485_vm4 = vcmask 913216  }
 0x6f2   :  { %2501 = vrot.lane.b32.xlu0 %v2500_v11, %s2900_s17  ;;  %s2916_s17 = smov 40   ;;  %v2517_v4 = vsel %vm2232_vm5, %v2516_v54, %v2515_v55  ;;  %v2518_v43 = vrot.slane %v2509_v39, 5  ;;  %vm2504_vm5 = vcmask 978816  }
 0x6f3   :  { %v2481_v47 = vsel %vm2235_vm6, %v2480_v51, %v2479_v49 }
 0x6f4   :  { %2311 = vrot.lane.b32.xlu1 %v2310_v22, %s2915_s26  ;;  %v2519_v52 = vsel %vm2235_vm6, %v2518_v43, %v2517_v4  ;;  %vm2523_vm6 = vcmask 1044416  }
 0x6f8   :  { %2330 = vrot.lane.b32.xlu1 %v2329_v45, %s2916_s17 }
 0x6fc   :  { %2368 = vrot.lane.b32.xlu1 %v2367_v28, %s2917_s8 }
 0x700   :  { %2482 = vrot.lane.b32.xlu1 %v2481_v47, %s2903_s23 }
 0x704   :  { %2520 = vrot.lane.b32.xlu1 %v2519_v52, %s2918_s9 }
 0x752   :  { %v2407_v53 = vpop.permute.xlu1 %2406 }
 0x754   :  { %v2388_v42 = vpop.permute.xlu0 %2387 }
 0x756   :  { %v2445_v44 = vpop.permute.xlu1 %2444 }
 0x758   :  { %v2426_v7 = vpop.permute.xlu0 %2425 }
 0x75a   :  { %v2255_v35 = vpop.permute.xlu1 %2254 }
 0x75b   :  { %2258 = vst.msk [vmem:[%s3643_s3] sm:$0xf] %vm2257_vm8, %v2255_v35 }
 0x75c   :  { %v2350_v13 = vpop.permute.xlu0 %2349 }
 0x75e   :  { %v2274_v15 = vpop.permute.xlu1 %2273 }
 0x75f   :  { %2277 = vst.msk [vmem:[%s3643_s3] sm:$0xf] %vm2276_vm9, %v2274_v15 }
 0x760   :  { %v2464_v40 = vpop.permute.xlu0 %2463 }
 0x762   :  { %v2293_v12 = vpop.permute.xlu1 %2292 }
 0x763   :  { %2296 = vst.msk [vmem:[%s3643_s3] sm:$0xf] %vm2295_vm10, %v2293_v12 }
 0x764   :  { %v2502_v61 = vpop.permute.xlu0 %2501 }
 0x766   :  { %v2312_v46 = vpop.permute.xlu1 %2311 }
 0x767   :  { %2315 = vst.msk [vmem:[%s3643_s3] sm:$0xf] %vm2314_vm11, %v2312_v46 }
 0x76a   :  { %v2331_v58 = vpop.permute.xlu1 %2330 }
 0x76b   :  { %2334 = vst.msk [vmem:[%s3643_s3] sm:$0xf] %vm2333_vm12, %v2331_v58 }
 0x76c   :  { %2353 = vst.msk [vmem:[%s3643_s3] sm:$0xf] %vm2352_vm13, %v2350_v13 }
 0x76e   :  { %v2369_v59 = vpop.permute.xlu1 %2368 }
 0x76f   :  { %2372 = vst.msk [vmem:[%s3643_s3] sm:$0xf] %vm2371_vm14, %v2369_v59 }
 0x770   :  { %2391 = vst.msk [vmem:[%s3643_s3] sm:$0xf] %vm2390_vm15, %v2388_v42 }
 0x771   :  { %2410 = vst.msk [vmem:[%s3643_s3] sm:$0xf] %vm2409_vm0, %v2407_v53 }
 0x772   :  { %v2483_v60 = vpop.permute.xlu1 %2482  ;;  %2429 = vst.msk [vmem:[%s3643_s3] sm:$0xf] %vm2428_vm1, %v2426_v7 }
 0x773   :  { %2448 = vst.msk [vmem:[%s3643_s3] sm:$0xf] %vm2447_vm2, %v2445_v44 }
 0x774   :  { %2467 = vst.msk [vmem:[%s3643_s3] sm:$0xf] %vm2466_vm3, %v2464_v40 }
 0x775   :  { %2486 = vst.msk [vmem:[%s3643_s3] sm:$0xf] %vm2485_vm4, %v2483_v60 }
 0x776   :  { %v2521_v0 = vpop.permute.xlu1 %2520  ;;  %2505 = vst.msk [vmem:[%s3643_s3] sm:$0xf] %vm2504_vm5, %v2502_v61 }
 0x777   :  { %2524 = vst.msk [vmem:[%s3643_s3] sm:$0xf] %vm2523_vm6, %v2521_v0 }

</bundles_post_ra>
